<compile_context>
chip_gen: v7x
topology: tpu7x:2x2x1
jax: 0.10.0
libtpu: 0.0.40
codegen_flags: <defaults>
</compile_context>

<pallas_src>
import functools
import numpy as np

import jax
import jax.numpy as jnp
from jax import lax
from jax.experimental import pallas as pl
from jax.experimental.pallas import tpu as pltpu


D_PAD = 128  # lane-dense padded width for the channel dim and ff_dim


# ----------------------------------------------------------------------------
# Fused Pallas kernel: padding + all encoder layers + dense head (one call)
# ----------------------------------------------------------------------------
def fused_transformer_kernel(x0_ref, wqkv_ref, wo_ref, vecs_ref, w1_ref, w2_ref,
                             d1w_ref, d1b_ref, d2w_ref, d2b_ref,
                             o_ref, x_sc, *, n_layers, n_heads, d_k, d_v, d_real):
    f32 = jnp.float32
    B, S, Dp = x_sc.shape
    H, dk, dv, D = n_heads, d_k, d_v, d_real

    # Fold the host-side zero-pad into the kernel: zero the resident scratch,
    # masked-store the real channels into lanes [:D].
    x_sc[...] = jnp.zeros_like(x_sc)
    x_sc[:, :, 0:D] = x0_ref[...]
    x = x_sc[...]                                               # (B, S, Dp)

    # mask of real (unpadded) channels, used only for LayerNorm statistics
    col = lax.broadcasted_iota(jnp.int32, (1, 1, Dp), 2)
    cmask = (col < D).astype(f32)
    inv_d = 1.0 / float(D)

    def layernorm(y, g, b):
        # padded lanes of y are zero; stats over the real D channels only.
        mu = jnp.sum(y, axis=-1, keepdims=True) * inv_d
        cen = (y - mu) * cmask
        var = jnp.sum(cen * cen, axis=-1, keepdims=True) * inv_d
        # g, b are zero in the padded lanes -> output pads stay exactly zero.
        return cen * lax.rsqrt(var + 1e-6) * g + b

    q_off, k_off, v_off = 0, H * dk, 2 * H * dk
    scale = 1.0 / float(np.sqrt(dk))

    # ---- encoder stack: static unrolled loop, weights fully VMEM-resident ----
    for li in range(n_layers):
        wqkv = wqkv_ref[li]                  # (Dp, 2*H*dk + H*dv)
        wo = wo_ref[li]                      # (H*dv, Dp)
        vecs = vecs_ref[li]                  # (8, Dp) packed small vectors
        bo, ln1g, ln1b = vecs[0:1], vecs[1:2], vecs[2:3]
        b1, b2 = vecs[3:4], vecs[4:5]
        ln2g, ln2b = vecs[5:6], vecs[6:7]
        w1 = w1_ref[li]                      # (Dp, FFp)
        w2 = w2_ref[li]                      # (FFp, Dp)

        # multi-head attention: one packed QKV matmul for the whole batch
        x2d = x.reshape(B * S, Dp)
        qkv = jnp.dot(x2d, wqkv, preferred_element_type=f32).reshape(B, S, -1)

        # per-(b,h) score/softmax/PV is tiny and unavoidable; heads are then
        # concatenated and projected with ONE (B*S,H*dv)@(H*dv,Dp) matmul.
        rows = []
        for b in range(B):                   # B, H small & static -> unrolled
            per_head = []
            for h in range(H):
                q = qkv[b, :, q_off + h * dk: q_off + (h + 1) * dk]   # (S, dk)
                k = qkv[b, :, k_off + h * dk: k_off + (h + 1) * dk]   # (S, dk)
                v = qkv[b, :, v_off + h * dv: v_off + (h + 1) * dv]   # (S, dv)
                s = lax.dot_general(q, k, (((1,), (1,)), ((), ())),
                                    preferred_element_type=f32) * scale  # (S,S)
                s = s - jnp.max(s, axis=-1, keepdims=True)
                p = jnp.exp(s)
                p = p * pl.reciprocal(jnp.sum(p, axis=-1, keepdims=True),
                                      approx=True)
                per_head.append(jnp.dot(p, v, preferred_element_type=f32))
            rows.append(jnp.concatenate(per_head, axis=-1))            # (S, H*dv)
        heads_all = jnp.concatenate(rows, axis=0)                      # (B*S, H*dv)
        proj = (jnp.dot(heads_all, wo, preferred_element_type=f32)
                .reshape(B, S, Dp) + bo)

        attn = layernorm(x + proj, ln1g, ln1b)

        # position-wise FF (Conv1d kernel_size=1 == per-position linear)
        a2d = attn.reshape(B * S, Dp)
        h1 = jnp.maximum(jnp.dot(a2d, w1, preferred_element_type=f32) + b1, 0.0)
        h2 = jnp.maximum(jnp.dot(h1, w2, preferred_element_type=f32) + b2, 0.0)
        x = layernorm(attn + h2.reshape(B, S, Dp), ln2g, ln2b)

    # ---- dense head (fused) ----
    n_hidden = d1b_ref.shape[-1]
    h = jnp.zeros((B, n_hidden), f32)
    # flatten(B, S*Dp) @ W  ==  sum_s x[:, s, :] @ W[s]   (no lane-dim reshape)
    for s_pos in range(S):
        h = h + jnp.dot(x[:, s_pos, :], d1w_ref[s_pos],
                        preferred_element_type=f32)
    h = jnp.maximum(h + d1b_ref[...], 0.0)
    o_ref[...] = (jnp.dot(h, d2w_ref[...], preferred_element_type=f32)
                  + d2b_ref[...])


# ----------------------------------------------------------------------------
# Wrappers
# ----------------------------------------------------------------------------
def fused_transformer_pallas(x, pk):
    B, S, _ = x.shape
    L = pk["wqkv"].shape[0]
    E = pk["d2_w"].shape[1]
    Dp = pk["d_pad"]

    kernel = functools.partial(
        fused_transformer_kernel,
        n_layers=L, n_heads=pk["n_heads"], d_k=pk["d_k"], d_v=pk["d_v"],
        d_real=pk["d_real"])

    vmem = pl.BlockSpec(memory_space=pltpu.MemorySpace.VMEM)
    return pl.pallas_call(
        kernel,
        out_shape=jax.ShapeDtypeStruct((B, E), jnp.float32),
        in_specs=[vmem] * 10,                 # whole arrays resident in VMEM
        out_specs=vmem,
        scratch_shapes=[pltpu.VMEM((B, S, Dp), jnp.float32)],
    )(x, pk["wqkv"], pk["wo"], pk["vecs"], pk["w1"], pk["w2"],
      pk["d1_w"], pk["d1_b"], pk["d2_w"], pk["d2_b"])


def transformer_forward(in_seq, pk):
    """in_seq: (B, seq_len, feat); returns (B, encoding_dim)."""
    # Time2Vector (tiny elementwise glue, kept in plain JAX).
    xm = jnp.mean(in_seq, axis=-1)                                     # (B, S)
    tl = pk["t2v_wl"] * xm + pk["t2v_bl"]
    tp = jnp.sin(xm * pk["t2v_wp"] + pk["t2v_bp"])
    x = jnp.concatenate([in_seq, tl[..., None], tp[..., None]], axis=-1)  # (B,S,D)
    assert x.shape[-1] == pk["d_real"]
    return fused_transformer_pallas(x.astype(jnp.float32), pk)


# ----------------------------------------------------------------------------
# Host-side weight packing / lane padding (done once, outside the forward)
# ----------------------------------------------------------------------------
def pack_params(params, *, d_pad=D_PAD):
    layers = params["layers"]
    H, D, dk = layers[0]["wq"].shape
    dv = layers[0]["wv"].shape[2]
    ff = layers[0]["w1"].shape[1]
    assert D <= d_pad and ff <= d_pad
    ff_pad = d_pad

    wqkv_l, wo_l, vecs_l, w1_l, w2_l = [], [], [], [], []
    for p in layers:
        wq = jnp.transpose(p["wq"], (1, 0, 2)).reshape(D, H * dk)
        wk = jnp.transpose(p["wk"], (1, 0, 2)).reshape(D, H * dk)
        wv = jnp.transpose(p["wv"], (1, 0, 2)).reshape(D, H * dv)
        wqkv = jnp.concatenate([wq, wk, wv], axis=1)            # (D, 2Hdk+Hdv)
        wqkv_l.append(jnp.zeros((d_pad, wqkv.shape[1]), jnp.float32).at[:D].set(wqkv))

        wo_l.append(jnp.zeros((H * dv, d_pad), jnp.float32).at[:, :D].set(p["wo"]))

        vecs = jnp.zeros((8, d_pad), jnp.float32)
        vecs = vecs.at[0, :D].set(p["bo"][0])
        vecs = vecs.at[1, :D].set(p["ln1_g"][0])
        vecs = vecs.at[2, :D].set(p["ln1_b"][0])
        vecs = vecs.at[3, :ff].set(p["b1"][0])
        vecs = vecs.at[4, :D].set(p["b2"][0])
        vecs = vecs.at[5, :D].set(p["ln2_g"][0])
        vecs = vecs.at[6, :D].set(p["ln2_b"][0])
        vecs_l.append(vecs)

        w1_l.append(jnp.zeros((d_pad, ff_pad), jnp.float32).at[:D, :ff].set(p["w1"]))
        w2_l.append(jnp.zeros((ff_pad, d_pad), jnp.float32).at[:ff, :D].set(p["w2"]))

    head = params["head"]
    S = params["t2v_wl"].shape[0]
    n_hidden = head["d1_w"].shape[1]
    d1w = head["d1_w"].reshape(S, D, n_hidden)            # flatten: s-major, d-minor
    d1w_pad = jnp.zeros((S, d_pad, n_hidden), jnp.float32).at[:, :D, :].set(d1w)

    return {
        "wqkv": jnp.stack(wqkv_l), "wo": jnp.stack(wo_l), "vecs": jnp.stack(vecs_l),
        "w1": jnp.stack(w1_l), "w2": jnp.stack(w2_l),
        "d1_w": d1w_pad, "d1_b": head["d1_b"], "d2_w": head["d2_w"], "d2_b": head["d2_b"],
        "t2v_wl": params["t2v_wl"], "t2v_bl": params["t2v_bl"],
        "t2v_wp": params["t2v_wp"], "t2v_bp": params["t2v_bp"],
        "n_heads": H, "d_k": dk, "d_v": dv, "d_real": D, "d_pad": d_pad,
    }


# ----------------------------------------------------------------------------
# Pure-JAX reference (same math as the PyTorch module, dropout = identity)
# ----------------------------------------------------------------------------
def transformer_reference(in_seq, params):
    hp = lax.Precision.HIGHEST
    xm = jnp.mean(in_seq, axis=-1)
    tl = params["t2v_wl"] * xm + params["t2v_bl"]
    tp = jnp.sin(xm * params["t2v_wp"] + params["t2v_bp"])
    x = jnp.concatenate([in_seq, tl[..., None], tp[..., None]], axis=-1)

    def layernorm(y, g, b):
        mu = jnp.mean(y, axis=-1, keepdims=True)
        var = jnp.mean((y - mu) ** 2, axis=-1, keepdims=True)
        return (y - mu) / jnp.sqrt(var + 1e-6) * g + b

    for p in params["layers"]:
        H, _, dk = p["wq"].shape
        heads = []
        for h in range(H):
            q = jnp.einsum("bsd,dk->bsk", x, p["wq"][h], precision=hp)
            k = jnp.einsum("bsd,dk->bsk", x, p["wk"][h], precision=hp)
            v = jnp.einsum("bsd,dk->bsk", x, p["wv"][h], precision=hp)
            s = jnp.einsum("bqk,bsk->bqs", q, k, precision=hp) / np.sqrt(dk)
            pw = jax.nn.softmax(s, axis=-1)
            heads.append(jnp.einsum("bqs,bsk->bqk", pw, v, precision=hp))
        concat = jnp.concatenate(heads, axis=-1)
        proj = jnp.einsum("bsh,hd->bsd", concat, p["wo"], precision=hp) + p["bo"]
        attn = layernorm(x + proj, p["ln1_g"], p["ln1_b"])
        ff = jax.nn.relu(jnp.einsum("bsd,df->bsf", attn, p["w1"], precision=hp) + p["b1"])
        ff = jax.nn.relu(jnp.einsum("bsf,fd->bsd", ff, p["w2"], precision=hp) + p["b2"])
        x = layernorm(attn + ff, p["ln2_g"], p["ln2_b"])

    hd = params["head"]
    x_flat = x.reshape(x.shape[0], -1)
    h = jax.nn.relu(jnp.dot(x_flat, hd["d1_w"], precision=hp) + hd["d1_b"])
    return jnp.dot(h, hd["d2_w"], precision=hp) + hd["d2_b"]


# ----------------------------------------------------------------------------
# Deterministic parameter init
# ----------------------------------------------------------------------------
def xavier_uniform(key, shape):
    fan_in, fan_out = shape[-2], shape[-1]
    bound = float(np.sqrt(6.0 / (fan_in + fan_out)))
    return jax.random.uniform(key, shape, jnp.float32, -bound, bound)


def make_params(key, *, d_k, d_v, input_shape, n_heads, n_layers, ff_dim,
                seq_len, encoding_dim):
    keys = jax.random.split(key, 5 + n_layers)
    params = {
        "t2v_wl": jax.random.uniform(keys[0], (seq_len,), jnp.float32),
        "t2v_bl": jax.random.uniform(keys[1], (seq_len,), jnp.float32),
        "t2v_wp": jax.random.uniform(keys[2], (seq_len,), jnp.float32),
        "t2v_bp": jax.random.uniform(keys[3], (seq_len,), jnp.float32),
        "layers": [],
    }
    D = input_shape
    for li in range(n_layers):
        lk = jax.random.split(keys[5 + li], 8)
        params["layers"].append({
            "wq": xavier_uniform(lk[0], (n_heads, D, d_k)),
            "wk": xavier_uniform(lk[1], (n_heads, D, d_k)),
            "wv": xavier_uniform(lk[2], (n_heads, D, d_v)),
            "wo": xavier_uniform(lk[3], (n_heads * d_v, D)),
            "bo": jnp.zeros((1, D), jnp.float32),
            "ln1_g": jnp.ones((1, D), jnp.float32),
            "ln1_b": jnp.zeros((1, D), jnp.float32),
            "w1": xavier_uniform(lk[4], (D, ff_dim)),
            "b1": jnp.zeros((1, ff_dim), jnp.float32),
            "w2": xavier_uniform(lk[5], (ff_dim, D)),
            "b2": jnp.zeros((1, D), jnp.float32),
            "ln2_g": jnp.ones((1, D), jnp.float32),
            "ln2_b": jnp.zeros((1, D), jnp.float32),
        })
    hk = jax.random.split(keys[4], 2)
    params["head"] = {
        "d1_w": xavier_uniform(hk[0], (seq_len * D, 64)),
        "d1_b": jnp.zeros((1, 64), jnp.float32),
        "d2_w": xavier_uniform(hk[1], (64, encoding_dim)),
        "d2_b": jnp.zeros((1, encoding_dim), jnp.float32),
    }
    return params


# ----------------------------------------------------------------------------
if __name__ == "__main__":
    batch, seq_len, feat = 2, 8, 6
    d_k, d_v, n_heads, n_layers = 4, 4, 2, 2
    input_shape = feat + 2          # Time2Vector appends 2 features -> D = 8
    ff_dim, encoding_dim = 16, 4

    key = jax.random.PRNGKey(0)
    pkey, xkey = jax.random.split(key)
    params = make_params(pkey, d_k=d_k, d_v=d_v, input_shape=input_shape,
                         n_heads=n_heads, n_layers=n_layers, ff_dim=ff_dim,
                         seq_len=seq_len, encoding_dim=encoding_dim)
    packed = pack_params(params)
    in_seq = jax.random.normal(xkey, (batch, seq_len, feat), jnp.float32)

    out = jax.block_until_ready(transformer_forward(in_seq, packed))
    ref = jax.block_until_ready(transformer_reference(in_seq, params))

    # Slightly looser tolerance than f32 roundoff: softmax normalization uses
    # the EUP approximate reciprocal (pl.reciprocal(..., approx=True)).
    np.testing.assert_allclose(np.asarray(out), np.asarray(ref),
                               atol=5e-3, rtol=5e-3)
    assert out.shape == (batch, encoding_dim)
    print("KERNEL_OK")
</pallas_src>

<mosaic_0001>
module attributes {stable_mosaic.version = 11 : i64} {
  func.func @fused_transformer_kernel(%arg0: memref<2x8x8xf32, #tpu.memory_space<vmem>>, %arg1: memref<2x128x24xf32, #tpu.memory_space<vmem>>, %arg2: memref<2x8x128xf32, #tpu.memory_space<vmem>>, %arg3: memref<2x8x128xf32, #tpu.memory_space<vmem>>, %arg4: memref<2x128x128xf32, #tpu.memory_space<vmem>>, %arg5: memref<2x128x128xf32, #tpu.memory_space<vmem>>, %arg6: memref<8x128x64xf32, #tpu.memory_space<vmem>>, %arg7: memref<1x64xf32, #tpu.memory_space<vmem>>, %arg8: memref<64x4xf32, #tpu.memory_space<vmem>>, %arg9: memref<1x4xf32, #tpu.memory_space<vmem>>, %arg10: memref<2x4xf32, #tpu.memory_space<vmem>>, %arg11: memref<2x8x128xf32, #tpu.memory_space<vmem>>) attributes {dimension_semantics = [], scalar_prefetch = 0 : i64, scratch_operands = 1 : i64, tpu.core_type = #tpu.core_type<tc>} {
    %cst = arith.constant 0.000000e+00 : f32
    %0 = vector.broadcast %cst : f32 to vector<2x8x128xf32>
    %c0 = arith.constant 0 : index
    %c0_0 = arith.constant 0 : index
    %c0_1 = arith.constant 0 : index
    %1 = vector.load %arg11[%c0, %c0_0, %c0_1] : memref<2x8x128xf32, #tpu.memory_space<vmem>>, vector<2x8x128xf32>
    tpu.vector_store %arg11[%c0, %c0_0, %c0_1], %0 {strides = array<i32>} : memref<2x8x128xf32, #tpu.memory_space<vmem>>, vector<2x8x128xf32>,
    %c0_2 = arith.constant 0 : index
    %c0_3 = arith.constant 0 : index
    %c0_4 = arith.constant 0 : index
    %2 = vector.load %arg0[%c0_2, %c0_3, %c0_4] : memref<2x8x8xf32, #tpu.memory_space<vmem>>, vector<2x8x8xf32>
    %c0_5 = arith.constant 0 : index
    %c0_6 = arith.constant 0 : index
    %c0_7 = arith.constant 0 : index
    %3 = vector.load %arg11[%c0_5, %c0_6, %c0_7] : memref<2x8x128xf32, #tpu.memory_space<vmem>>, vector<2x8x8xf32>
    tpu.vector_store %arg11[%c0_5, %c0_6, %c0_7], %2 {strides = array<i32>} : memref<2x8x128xf32, #tpu.memory_space<vmem>>, vector<2x8x8xf32>,
    %c0_8 = arith.constant 0 : index
    %c0_9 = arith.constant 0 : index
    %c0_10 = arith.constant 0 : index
    %4 = vector.load %arg11[%c0_8, %c0_9, %c0_10] : memref<2x8x128xf32, #tpu.memory_space<vmem>>, vector<2x8x128xf32>
    %5 = tpu.iota {dimensions = array<i32: 2>} : vector<1x1x128xi32>
    %c8_i32 = arith.constant 8 : i32
    %6 = vector.broadcast %c8_i32 : i32 to vector<1x1x128xi32>
    %7 = arith.cmpi slt, %5, %6 : vector<1x1x128xi32>
    %8 = arith.extui %7 : vector<1x1x128xi1> to vector<1x1x128xi32>
    %9 = arith.sitofp %8 : vector<1x1x128xi32> to vector<1x1x128xf32>
    %c0_11 = arith.constant 0 : index
    %c0_12 = arith.constant 0 : index
    %c0_13 = arith.constant 0 : index
    %10 = vector.load %arg1[%c0_11, %c0_12, %c0_13] : memref<2x128x24xf32, #tpu.memory_space<vmem>>, vector<1x128x24xf32>
    %11 = vector.shape_cast %10 : vector<1x128x24xf32> to vector<128x24xf32>
    %c0_14 = arith.constant 0 : index
    %c0_15 = arith.constant 0 : index
    %c0_16 = arith.constant 0 : index
    %12 = vector.load %arg2[%c0_14, %c0_15, %c0_16] : memref<2x8x128xf32, #tpu.memory_space<vmem>>, vector<1x8x128xf32>
    %13 = vector.shape_cast %12 : vector<1x8x128xf32> to vector<8x128xf32>
    %c0_17 = arith.constant 0 : index
    %c0_18 = arith.constant 0 : index
    %c0_19 = arith.constant 0 : index
    %14 = vector.load %arg3[%c0_17, %c0_18, %c0_19] : memref<2x8x128xf32, #tpu.memory_space<vmem>>, vector<1x8x128xf32>
    %15 = vector.shape_cast %14 : vector<1x8x128xf32> to vector<8x128xf32>
    %16 = vector.extract_strided_slice %15 {offsets = [0, 0], sizes = [1, 128], strides = [1, 1]} : vector<8x128xf32> to vector<1x128xf32>
    %17 = vector.extract_strided_slice %15 {offsets = [1, 0], sizes = [1, 128], strides = [1, 1]} : vector<8x128xf32> to vector<1x128xf32>
    %18 = vector.extract_strided_slice %15 {offsets = [2, 0], sizes = [1, 128], strides = [1, 1]} : vector<8x128xf32> to vector<1x128xf32>
    %19 = vector.extract_strided_slice %15 {offsets = [3, 0], sizes = [1, 128], strides = [1, 1]} : vector<8x128xf32> to vector<1x128xf32>
    %20 = vector.extract_strided_slice %15 {offsets = [4, 0], sizes = [1, 128], strides = [1, 1]} : vector<8x128xf32> to vector<1x128xf32>
    %21 = vector.extract_strided_slice %15 {offsets = [5, 0], sizes = [1, 128], strides = [1, 1]} : vector<8x128xf32> to vector<1x128xf32>
    %22 = vector.extract_strided_slice %15 {offsets = [6, 0], sizes = [1, 128], strides = [1, 1]} : vector<8x128xf32> to vector<1x128xf32>
    %c0_20 = arith.constant 0 : index
    %c0_21 = arith.constant 0 : index
    %c0_22 = arith.constant 0 : index
    %23 = vector.load %arg4[%c0_20, %c0_21, %c0_22] : memref<2x128x128xf32, #tpu.memory_space<vmem>>, vector<1x128x128xf32>
    %24 = vector.shape_cast %23 : vector<1x128x128xf32> to vector<128x128xf32>
    %c0_23 = arith.constant 0 : index
    %c0_24 = arith.constant 0 : index
    %c0_25 = arith.constant 0 : index
    %25 = vector.load %arg5[%c0_23, %c0_24, %c0_25] : memref<2x128x128xf32, #tpu.memory_space<vmem>>, vector<1x128x128xf32>
    %26 = vector.shape_cast %25 : vector<1x128x128xf32> to vector<128x128xf32>
    %27 = vector.shape_cast %4 : vector<2x8x128xf32> to vector<16x128xf32>
    %cst_26 = arith.constant dense<0.000000e+00> : vector<16x24xf32>
    %28 = tpu.matmul %27, %11, %cst_26 {dimension_numbers = #tpu.dot_dimension_numbers<[1], [0], [0], [1], [0, 0, 1, 1], [], []>} : vector<16x128xf32>, vector<128x24xf32>, vector<16x24xf32> -> vector<16x24xf32>
    %29 = vector.shape_cast %28 : vector<16x24xf32> to vector<2x8x24xf32>
    %30 = vector.extract_strided_slice %29 {offsets = [0, 0, 0], sizes = [1, 8, 4], strides = [1, 1, 1]} : vector<2x8x24xf32> to vector<1x8x4xf32>
    %31 = vector.shape_cast %30 : vector<1x8x4xf32> to vector<8x4xf32>
    %32 = vector.extract_strided_slice %29 {offsets = [0, 0, 8], sizes = [1, 8, 4], strides = [1, 1, 1]} : vector<2x8x24xf32> to vector<1x8x4xf32>
    %33 = vector.shape_cast %32 : vector<1x8x4xf32> to vector<8x4xf32>
    %34 = vector.extract_strided_slice %29 {offsets = [0, 0, 16], sizes = [1, 8, 4], strides = [1, 1, 1]} : vector<2x8x24xf32> to vector<1x8x4xf32>
    %35 = vector.shape_cast %34 : vector<1x8x4xf32> to vector<8x4xf32>
    %cst_27 = arith.constant dense<0.000000e+00> : vector<8x8xf32>
    %36 = tpu.matmul %31, %33, %cst_27 {dimension_numbers = #tpu.dot_dimension_numbers<[1], [1], [0], [0], [0, 0, 1, 0], [], []>} : vector<8x4xf32>, vector<8x4xf32>, vector<8x8xf32> -> vector<8x8xf32>
    %cst_28 = arith.constant 5.000000e-01 : f32
    %37 = vector.broadcast %cst_28 : f32 to vector<8x8xf32>
    %38 = arith.mulf %36, %37 : vector<8x8xf32>
    %cst_29 = arith.constant dense<0xFF800000> : vector<8xf32>
    %39 = vector.multi_reduction <maximumf>, %38, %cst_29 [1] : vector<8x8xf32> to vector<8xf32>
    %40 = vector.shape_cast %39 : vector<8xf32> to vector<8x1xf32>
    %41 = vector.broadcast %40 : vector<8x1xf32> to vector<8x8xf32>
    %42 = arith.subf %38, %41 : vector<8x8xf32>
    %43 = math.exp %42 : vector<8x8xf32>
    %cst_30 = arith.constant dense<0.000000e+00> : vector<8xf32>
    %44 = vector.multi_reduction <add>, %43, %cst_30 [1] : vector<8x8xf32> to vector<8xf32>
    %45 = vector.shape_cast %44 : vector<8xf32> to vector<8x1xf32>
    %46 = tpu.reciprocal %45 {approx = true} : vector<8x1xf32> -> vector<8x1xf32>
    %47 = vector.broadcast %46 : vector<8x1xf32> to vector<8x8xf32>
    %48 = arith.mulf %43, %47 : vector<8x8xf32>
    %cst_31 = arith.constant dense<0.000000e+00> : vector<8x4xf32>
    %49 = tpu.matmul %48, %35, %cst_31 {dimension_numbers = #tpu.dot_dimension_numbers<[1], [0], [0], [1], [0, 0, 1, 1], [], []>} : vector<8x8xf32>, vector<8x4xf32>, vector<8x4xf32> -> vector<8x4xf32>
    %50 = vector.extract_strided_slice %29 {offsets = [0, 0, 4], sizes = [1, 8, 4], strides = [1, 1, 1]} : vector<2x8x24xf32> to vector<1x8x4xf32>
    %51 = vector.shape_cast %50 : vector<1x8x4xf32> to vector<8x4xf32>
    %52 = vector.extract_strided_slice %29 {offsets = [0, 0, 12], sizes = [1, 8, 4], strides = [1, 1, 1]} : vector<2x8x24xf32> to vector<1x8x4xf32>
    %53 = vector.shape_cast %52 : vector<1x8x4xf32> to vector<8x4xf32>
    %54 = vector.extract_strided_slice %29 {offsets = [0, 0, 20], sizes = [1, 8, 4], strides = [1, 1, 1]} : vector<2x8x24xf32> to vector<1x8x4xf32>
    %55 = vector.shape_cast %54 : vector<1x8x4xf32> to vector<8x4xf32>
    %cst_32 = arith.constant dense<0.000000e+00> : vector<8x8xf32>
    %56 = tpu.matmul %51, %53, %cst_32 {dimension_numbers = #tpu.dot_dimension_numbers<[1], [1], [0], [0], [0, 0, 1, 0], [], []>} : vector<8x4xf32>, vector<8x4xf32>, vector<8x8xf32> -> vector<8x8xf32>
    %cst_33 = arith.constant 5.000000e-01 : f32
    %57 = vector.broadcast %cst_33 : f32 to vector<8x8xf32>
    %58 = arith.mulf %56, %57 : vector<8x8xf32>
    %cst_34 = arith.constant dense<0xFF800000> : vector<8xf32>
    %59 = vector.multi_reduction <maximumf>, %58, %cst_34 [1] : vector<8x8xf32> to vector<8xf32>
    %60 = vector.shape_cast %59 : vector<8xf32> to vector<8x1xf32>
    %61 = vector.broadcast %60 : vector<8x1xf32> to vector<8x8xf32>
    %62 = arith.subf %58, %61 : vector<8x8xf32>
    %63 = math.exp %62 : vector<8x8xf32>
    %cst_35 = arith.constant dense<0.000000e+00> : vector<8xf32>
    %64 = vector.multi_reduction <add>, %63, %cst_35 [1] : vector<8x8xf32> to vector<8xf32>
    %65 = vector.shape_cast %64 : vector<8xf32> to vector<8x1xf32>
    %66 = tpu.reciprocal %65 {approx = true} : vector<8x1xf32> -> vector<8x1xf32>
    %67 = vector.broadcast %66 : vector<8x1xf32> to vector<8x8xf32>
    %68 = arith.mulf %63, %67 : vector<8x8xf32>
    %cst_36 = arith.constant dense<0.000000e+00> : vector<8x4xf32>
    %69 = tpu.matmul %68, %55, %cst_36 {dimension_numbers = #tpu.dot_dimension_numbers<[1], [0], [0], [1], [0, 0, 1, 1], [], []>} : vector<8x8xf32>, vector<8x4xf32>, vector<8x4xf32> -> vector<8x4xf32>
    %70 = tpu.concatenate %49, %69 in 1 : vector<8x4xf32>, vector<8x4xf32> -> vector<8x8xf32>
    %71 = vector.extract_strided_slice %29 {offsets = [1, 0, 0], sizes = [1, 8, 4], strides = [1, 1, 1]} : vector<2x8x24xf32> to vector<1x8x4xf32>
    %72 = vector.shape_cast %71 : vector<1x8x4xf32> to vector<8x4xf32>
    %73 = vector.extract_strided_slice %29 {offsets = [1, 0, 8], sizes = [1, 8, 4], strides = [1, 1, 1]} : vector<2x8x24xf32> to vector<1x8x4xf32>
    %74 = vector.shape_cast %73 : vector<1x8x4xf32> to vector<8x4xf32>
    %75 = vector.extract_strided_slice %29 {offsets = [1, 0, 16], sizes = [1, 8, 4], strides = [1, 1, 1]} : vector<2x8x24xf32> to vector<1x8x4xf32>
    %76 = vector.shape_cast %75 : vector<1x8x4xf32> to vector<8x4xf32>
    %cst_37 = arith.constant dense<0.000000e+00> : vector<8x8xf32>
    %77 = tpu.matmul %72, %74, %cst_37 {dimension_numbers = #tpu.dot_dimension_numbers<[1], [1], [0], [0], [0, 0, 1, 0], [], []>} : vector<8x4xf32>, vector<8x4xf32>, vector<8x8xf32> -> vector<8x8xf32>
    %cst_38 = arith.constant 5.000000e-01 : f32
    %78 = vector.broadcast %cst_38 : f32 to vector<8x8xf32>
    %79 = arith.mulf %77, %78 : vector<8x8xf32>
    %cst_39 = arith.constant dense<0xFF800000> : vector<8xf32>
    %80 = vector.multi_reduction <maximumf>, %79, %cst_39 [1] : vector<8x8xf32> to vector<8xf32>
    %81 = vector.shape_cast %80 : vector<8xf32> to vector<8x1xf32>
    %82 = vector.broadcast %81 : vector<8x1xf32> to vector<8x8xf32>
    %83 = arith.subf %79, %82 : vector<8x8xf32>
    %84 = math.exp %83 : vector<8x8xf32>
    %cst_40 = arith.constant dense<0.000000e+00> : vector<8xf32>
    %85 = vector.multi_reduction <add>, %84, %cst_40 [1] : vector<8x8xf32> to vector<8xf32>
    %86 = vector.shape_cast %85 : vector<8xf32> to vector<8x1xf32>
    %87 = tpu.reciprocal %86 {approx = true} : vector<8x1xf32> -> vector<8x1xf32>
    %88 = vector.broadcast %87 : vector<8x1xf32> to vector<8x8xf32>
    %89 = arith.mulf %84, %88 : vector<8x8xf32>
    %cst_41 = arith.constant dense<0.000000e+00> : vector<8x4xf32>
    %90 = tpu.matmul %89, %76, %cst_41 {dimension_numbers = #tpu.dot_dimension_numbers<[1], [0], [0], [1], [0, 0, 1, 1], [], []>} : vector<8x8xf32>, vector<8x4xf32>, vector<8x4xf32> -> vector<8x4xf32>
    %91 = vector.extract_strided_slice %29 {offsets = [1, 0, 4], sizes = [1, 8, 4], strides = [1, 1, 1]} : vector<2x8x24xf32> to vector<1x8x4xf32>
    %92 = vector.shape_cast %91 : vector<1x8x4xf32> to vector<8x4xf32>
    %93 = vector.extract_strided_slice %29 {offsets = [1, 0, 12], sizes = [1, 8, 4], strides = [1, 1, 1]} : vector<2x8x24xf32> to vector<1x8x4xf32>
    %94 = vector.shape_cast %93 : vector<1x8x4xf32> to vector<8x4xf32>
    %95 = vector.extract_strided_slice %29 {offsets = [1, 0, 20], sizes = [1, 8, 4], strides = [1, 1, 1]} : vector<2x8x24xf32> to vector<1x8x4xf32>
    %96 = vector.shape_cast %95 : vector<1x8x4xf32> to vector<8x4xf32>
    %cst_42 = arith.constant dense<0.000000e+00> : vector<8x8xf32>
    %97 = tpu.matmul %92, %94, %cst_42 {dimension_numbers = #tpu.dot_dimension_numbers<[1], [1], [0], [0], [0, 0, 1, 0], [], []>} : vector<8x4xf32>, vector<8x4xf32>, vector<8x8xf32> -> vector<8x8xf32>
    %cst_43 = arith.constant 5.000000e-01 : f32
    %98 = vector.broadcast %cst_43 : f32 to vector<8x8xf32>
    %99 = arith.mulf %97, %98 : vector<8x8xf32>
    %cst_44 = arith.constant dense<0xFF800000> : vector<8xf32>
    %100 = vector.multi_reduction <maximumf>, %99, %cst_44 [1] : vector<8x8xf32> to vector<8xf32>
    %101 = vector.shape_cast %100 : vector<8xf32> to vector<8x1xf32>
    %102 = vector.broadcast %101 : vector<8x1xf32> to vector<8x8xf32>
    %103 = arith.subf %99, %102 : vector<8x8xf32>
    %104 = math.exp %103 : vector<8x8xf32>
    %cst_45 = arith.constant dense<0.000000e+00> : vector<8xf32>
    %105 = vector.multi_reduction <add>, %104, %cst_45 [1] : vector<8x8xf32> to vector<8xf32>
    %106 = vector.shape_cast %105 : vector<8xf32> to vector<8x1xf32>
    %107 = tpu.reciprocal %106 {approx = true} : vector<8x1xf32> -> vector<8x1xf32>
    %108 = vector.broadcast %107 : vector<8x1xf32> to vector<8x8xf32>
    %109 = arith.mulf %104, %108 : vector<8x8xf32>
    %cst_46 = arith.constant dense<0.000000e+00> : vector<8x4xf32>
    %110 = tpu.matmul %109, %96, %cst_46 {dimension_numbers = #tpu.dot_dimension_numbers<[1], [0], [0], [1], [0, 0, 1, 1], [], []>} : vector<8x8xf32>, vector<8x4xf32>, vector<8x4xf32> -> vector<8x4xf32>
    %111 = tpu.concatenate %90, %110 in 1 : vector<8x4xf32>, vector<8x4xf32> -> vector<8x8xf32>
    %112 = tpu.concatenate %70, %111 in 0 : vector<8x8xf32>, vector<8x8xf32> -> vector<16x8xf32>
    %cst_47 = arith.constant dense<0.000000e+00> : vector<16x128xf32>
    %113 = tpu.matmul %112, %13, %cst_47 {dimension_numbers = #tpu.dot_dimension_numbers<[1], [0], [0], [1], [0, 0, 1, 1], [], []>} : vector<16x8xf32>, vector<8x128xf32>, vector<16x128xf32> -> vector<16x128xf32>
    %114 = vector.shape_cast %113 : vector<16x128xf32> to vector<2x8x128xf32>
    %115 = vector.shape_cast %16 : vector<1x128xf32> to vector<1x1x128xf32>
    %116 = vector.broadcast %115 : vector<1x1x128xf32> to vector<2x8x128xf32>
    %117 = arith.addf %114, %116 : vector<2x8x128xf32>
    %118 = arith.addf %4, %117 : vector<2x8x128xf32>
    %cst_48 = arith.constant dense<0.000000e+00> : vector<2x8xf32>
    %119 = vector.multi_reduction <add>, %118, %cst_48 [2] : vector<2x8x128xf32> to vector<2x8xf32>
    %120 = vector.shape_cast %119 : vector<2x8xf32> to vector<2x8x1xf32>
    %cst_49 = arith.constant 1.250000e-01 : f32
    %121 = vector.broadcast %cst_49 : f32 to vector<2x8x1xf32>
    %122 = arith.mulf %120, %121 : vector<2x8x1xf32>
    %123 = vector.broadcast %122 : vector<2x8x1xf32> to vector<2x8x128xf32>
    %124 = arith.subf %118, %123 : vector<2x8x128xf32>
    %125 = vector.broadcast %9 : vector<1x1x128xf32> to vector<2x8x128xf32>
    %126 = arith.mulf %124, %125 : vector<2x8x128xf32>
    %127 = arith.mulf %126, %126 : vector<2x8x128xf32>
    %cst_50 = arith.constant dense<0.000000e+00> : vector<2x8xf32>
    %128 = vector.multi_reduction <add>, %127, %cst_50 [2] : vector<2x8x128xf32> to vector<2x8xf32>
    %129 = vector.shape_cast %128 : vector<2x8xf32> to vector<2x8x1xf32>
    %cst_51 = arith.constant 1.250000e-01 : f32
    %130 = vector.broadcast %cst_51 : f32 to vector<2x8x1xf32>
    %131 = arith.mulf %129, %130 : vector<2x8x1xf32>
    %cst_52 = arith.constant 9.99999997E-7 : f32
    %132 = vector.broadcast %cst_52 : f32 to vector<2x8x1xf32>
    %133 = arith.addf %131, %132 : vector<2x8x1xf32>
    %134 = math.rsqrt %133 : vector<2x8x1xf32>
    %135 = vector.broadcast %134 : vector<2x8x1xf32> to vector<2x8x128xf32>
    %136 = arith.mulf %126, %135 : vector<2x8x128xf32>
    %137 = vector.shape_cast %17 : vector<1x128xf32> to vector<1x1x128xf32>
    %138 = vector.broadcast %137 : vector<1x1x128xf32> to vector<2x8x128xf32>
    %139 = arith.mulf %136, %138 : vector<2x8x128xf32>
    %140 = vector.shape_cast %18 : vector<1x128xf32> to vector<1x1x128xf32>
    %141 = vector.broadcast %140 : vector<1x1x128xf32> to vector<2x8x128xf32>
    %142 = arith.addf %139, %141 : vector<2x8x128xf32>
    %143 = vector.shape_cast %142 : vector<2x8x128xf32> to vector<16x128xf32>
    %cst_53 = arith.constant dense<0.000000e+00> : vector<16x128xf32>
    %144 = tpu.matmul %143, %24, %cst_53 {dimension_numbers = #tpu.dot_dimension_numbers<[1], [0], [0], [1], [0, 0, 1, 1], [], []>} : vector<16x128xf32>, vector<128x128xf32>, vector<16x128xf32> -> vector<16x128xf32>
    %145 = vector.broadcast %19 : vector<1x128xf32> to vector<16x128xf32>
    %146 = arith.addf %144, %145 : vector<16x128xf32>
    %cst_54 = arith.constant 0.000000e+00 : f32
    %147 = vector.broadcast %cst_54 : f32 to vector<16x128xf32>
    %148 = arith.maximumf %146, %147 : vector<16x128xf32>
    %cst_55 = arith.constant dense<0.000000e+00> : vector<16x128xf32>
    %149 = tpu.matmul %148, %26, %cst_55 {dimension_numbers = #tpu.dot_dimension_numbers<[1], [0], [0], [1], [0, 0, 1, 1], [], []>} : vector<16x128xf32>, vector<128x128xf32>, vector<16x128xf32> -> vector<16x128xf32>
    %150 = vector.broadcast %20 : vector<1x128xf32> to vector<16x128xf32>
    %151 = arith.addf %149, %150 : vector<16x128xf32>
    %cst_56 = arith.constant 0.000000e+00 : f32
    %152 = vector.broadcast %cst_56 : f32 to vector<16x128xf32>
    %153 = arith.maximumf %151, %152 : vector<16x128xf32>
    %154 = vector.shape_cast %153 : vector<16x128xf32> to vector<2x8x128xf32>
    %155 = arith.addf %142, %154 : vector<2x8x128xf32>
    %cst_57 = arith.constant dense<0.000000e+00> : vector<2x8xf32>
    %156 = vector.multi_reduction <add>, %155, %cst_57 [2] : vector<2x8x128xf32> to vector<2x8xf32>
    %157 = vector.shape_cast %156 : vector<2x8xf32> to vector<2x8x1xf32>
    %cst_58 = arith.constant 1.250000e-01 : f32
    %158 = vector.broadcast %cst_58 : f32 to vector<2x8x1xf32>
    %159 = arith.mulf %157, %158 : vector<2x8x1xf32>
    %160 = vector.broadcast %159 : vector<2x8x1xf32> to vector<2x8x128xf32>
    %161 = arith.subf %155, %160 : vector<2x8x128xf32>
    %162 = vector.broadcast %9 : vector<1x1x128xf32> to vector<2x8x128xf32>
    %163 = arith.mulf %161, %162 : vector<2x8x128xf32>
    %164 = arith.mulf %163, %163 : vector<2x8x128xf32>
    %cst_59 = arith.constant dense<0.000000e+00> : vector<2x8xf32>
    %165 = vector.multi_reduction <add>, %164, %cst_59 [2] : vector<2x8x128xf32> to vector<2x8xf32>
    %166 = vector.shape_cast %165 : vector<2x8xf32> to vector<2x8x1xf32>
    %cst_60 = arith.constant 1.250000e-01 : f32
    %167 = vector.broadcast %cst_60 : f32 to vector<2x8x1xf32>
    %168 = arith.mulf %166, %167 : vector<2x8x1xf32>
    %cst_61 = arith.constant 9.99999997E-7 : f32
    %169 = vector.broadcast %cst_61 : f32 to vector<2x8x1xf32>
    %170 = arith.addf %168, %169 : vector<2x8x1xf32>
    %171 = math.rsqrt %170 : vector<2x8x1xf32>
    %172 = vector.broadcast %171 : vector<2x8x1xf32> to vector<2x8x128xf32>
    %173 = arith.mulf %163, %172 : vector<2x8x128xf32>
    %174 = vector.shape_cast %21 : vector<1x128xf32> to vector<1x1x128xf32>
    %175 = vector.broadcast %174 : vector<1x1x128xf32> to vector<2x8x128xf32>
    %176 = arith.mulf %173, %175 : vector<2x8x128xf32>
    %177 = vector.shape_cast %22 : vector<1x128xf32> to vector<1x1x128xf32>
    %178 = vector.broadcast %177 : vector<1x1x128xf32> to vector<2x8x128xf32>
    %179 = arith.addf %176, %178 : vector<2x8x128xf32>
    %c1 = arith.constant 1 : index
    %c0_62 = arith.constant 0 : index
    %c0_63 = arith.constant 0 : index
    %180 = vector.load %arg1[%c1, %c0_62, %c0_63] : memref<2x128x24xf32, #tpu.memory_space<vmem>>, vector<1x128x24xf32>
    %181 = vector.shape_cast %180 : vector<1x128x24xf32> to vector<128x24xf32>
    %c1_64 = arith.constant 1 : index
    %c0_65 = arith.constant 0 : index
    %c0_66 = arith.constant 0 : index
    %182 = vector.load %arg2[%c1_64, %c0_65, %c0_66] : memref<2x8x128xf32, #tpu.memory_space<vmem>>, vector<1x8x128xf32>
    %183 = vector.shape_cast %182 : vector<1x8x128xf32> to vector<8x128xf32>
    %c1_67 = arith.constant 1 : index
    %c0_68 = arith.constant 0 : index
    %c0_69 = arith.constant 0 : index
    %184 = vector.load %arg3[%c1_67, %c0_68, %c0_69] : memref<2x8x128xf32, #tpu.memory_space<vmem>>, vector<1x8x128xf32>
    %185 = vector.shape_cast %184 : vector<1x8x128xf32> to vector<8x128xf32>
    %186 = vector.extract_strided_slice %185 {offsets = [0, 0], sizes = [1, 128], strides = [1, 1]} : vector<8x128xf32> to vector<1x128xf32>
    %187 = vector.extract_strided_slice %185 {offsets = [1, 0], sizes = [1, 128], strides = [1, 1]} : vector<8x128xf32> to vector<1x128xf32>
    %188 = vector.extract_strided_slice %185 {offsets = [2, 0], sizes = [1, 128], strides = [1, 1]} : vector<8x128xf32> to vector<1x128xf32>
    %189 = vector.extract_strided_slice %185 {offsets = [3, 0], sizes = [1, 128], strides = [1, 1]} : vector<8x128xf32> to vector<1x128xf32>
    %190 = vector.extract_strided_slice %185 {offsets = [4, 0], sizes = [1, 128], strides = [1, 1]} : vector<8x128xf32> to vector<1x128xf32>
    %191 = vector.extract_strided_slice %185 {offsets = [5, 0], sizes = [1, 128], strides = [1, 1]} : vector<8x128xf32> to vector<1x128xf32>
    %192 = vector.extract_strided_slice %185 {offsets = [6, 0], sizes = [1, 128], strides = [1, 1]} : vector<8x128xf32> to vector<1x128xf32>
    %c1_70 = arith.constant 1 : index
    %c0_71 = arith.constant 0 : index
    %c0_72 = arith.constant 0 : index
    %193 = vector.load %arg4[%c1_70, %c0_71, %c0_72] : memref<2x128x128xf32, #tpu.memory_space<vmem>>, vector<1x128x128xf32>
    %194 = vector.shape_cast %193 : vector<1x128x128xf32> to vector<128x128xf32>
    %c1_73 = arith.constant 1 : index
    %c0_74 = arith.constant 0 : index
    %c0_75 = arith.constant 0 : index
    %195 = vector.load %arg5[%c1_73, %c0_74, %c0_75] : memref<2x128x128xf32, #tpu.memory_space<vmem>>, vector<1x128x128xf32>
    %196 = vector.shape_cast %195 : vector<1x128x128xf32> to vector<128x128xf32>
    %197 = vector.shape_cast %179 : vector<2x8x128xf32> to vector<16x128xf32>
    %cst_76 = arith.constant dense<0.000000e+00> : vector<16x24xf32>
    %198 = tpu.matmul %197, %181, %cst_76 {dimension_numbers = #tpu.dot_dimension_numbers<[1], [0], [0], [1], [0, 0, 1, 1], [], []>} : vector<16x128xf32>, vector<128x24xf32>, vector<16x24xf32> -> vector<16x24xf32>
    %199 = vector.shape_cast %198 : vector<16x24xf32> to vector<2x8x24xf32>
    %200 = vector.extract_strided_slice %199 {offsets = [0, 0, 0], sizes = [1, 8, 4], strides = [1, 1, 1]} : vector<2x8x24xf32> to vector<1x8x4xf32>
    %201 = vector.shape_cast %200 : vector<1x8x4xf32> to vector<8x4xf32>
    %202 = vector.extract_strided_slice %199 {offsets = [0, 0, 8], sizes = [1, 8, 4], strides = [1, 1, 1]} : vector<2x8x24xf32> to vector<1x8x4xf32>
    %203 = vector.shape_cast %202 : vector<1x8x4xf32> to vector<8x4xf32>
    %204 = vector.extract_strided_slice %199 {offsets = [0, 0, 16], sizes = [1, 8, 4], strides = [1, 1, 1]} : vector<2x8x24xf32> to vector<1x8x4xf32>
    %205 = vector.shape_cast %204 : vector<1x8x4xf32> to vector<8x4xf32>
    %cst_77 = arith.constant dense<0.000000e+00> : vector<8x8xf32>
    %206 = tpu.matmul %201, %203, %cst_77 {dimension_numbers = #tpu.dot_dimension_numbers<[1], [1], [0], [0], [0, 0, 1, 0], [], []>} : vector<8x4xf32>, vector<8x4xf32>, vector<8x8xf32> -> vector<8x8xf32>
    %cst_78 = arith.constant 5.000000e-01 : f32
    %207 = vector.broadcast %cst_78 : f32 to vector<8x8xf32>
    %208 = arith.mulf %206, %207 : vector<8x8xf32>
    %cst_79 = arith.constant dense<0xFF800000> : vector<8xf32>
    %209 = vector.multi_reduction <maximumf>, %208, %cst_79 [1] : vector<8x8xf32> to vector<8xf32>
    %210 = vector.shape_cast %209 : vector<8xf32> to vector<8x1xf32>
    %211 = vector.broadcast %210 : vector<8x1xf32> to vector<8x8xf32>
    %212 = arith.subf %208, %211 : vector<8x8xf32>
    %213 = math.exp %212 : vector<8x8xf32>
    %cst_80 = arith.constant dense<0.000000e+00> : vector<8xf32>
    %214 = vector.multi_reduction <add>, %213, %cst_80 [1] : vector<8x8xf32> to vector<8xf32>
    %215 = vector.shape_cast %214 : vector<8xf32> to vector<8x1xf32>
    %216 = tpu.reciprocal %215 {approx = true} : vector<8x1xf32> -> vector<8x1xf32>
    %217 = vector.broadcast %216 : vector<8x1xf32> to vector<8x8xf32>
    %218 = arith.mulf %213, %217 : vector<8x8xf32>
    %cst_81 = arith.constant dense<0.000000e+00> : vector<8x4xf32>
    %219 = tpu.matmul %218, %205, %cst_81 {dimension_numbers = #tpu.dot_dimension_numbers<[1], [0], [0], [1], [0, 0, 1, 1], [], []>} : vector<8x8xf32>, vector<8x4xf32>, vector<8x4xf32> -> vector<8x4xf32>
    %220 = vector.extract_strided_slice %199 {offsets = [0, 0, 4], sizes = [1, 8, 4], strides = [1, 1, 1]} : vector<2x8x24xf32> to vector<1x8x4xf32>
    %221 = vector.shape_cast %220 : vector<1x8x4xf32> to vector<8x4xf32>
    %222 = vector.extract_strided_slice %199 {offsets = [0, 0, 12], sizes = [1, 8, 4], strides = [1, 1, 1]} : vector<2x8x24xf32> to vector<1x8x4xf32>
    %223 = vector.shape_cast %222 : vector<1x8x4xf32> to vector<8x4xf32>
    %224 = vector.extract_strided_slice %199 {offsets = [0, 0, 20], sizes = [1, 8, 4], strides = [1, 1, 1]} : vector<2x8x24xf32> to vector<1x8x4xf32>
    %225 = vector.shape_cast %224 : vector<1x8x4xf32> to vector<8x4xf32>
    %cst_82 = arith.constant dense<0.000000e+00> : vector<8x8xf32>
    %226 = tpu.matmul %221, %223, %cst_82 {dimension_numbers = #tpu.dot_dimension_numbers<[1], [1], [0], [0], [0, 0, 1, 0], [], []>} : vector<8x4xf32>, vector<8x4xf32>, vector<8x8xf32> -> vector<8x8xf32>
    %cst_83 = arith.constant 5.000000e-01 : f32
    %227 = vector.broadcast %cst_83 : f32 to vector<8x8xf32>
    %228 = arith.mulf %226, %227 : vector<8x8xf32>
    %cst_84 = arith.constant dense<0xFF800000> : vector<8xf32>
    %229 = vector.multi_reduction <maximumf>, %228, %cst_84 [1] : vector<8x8xf32> to vector<8xf32>
    %230 = vector.shape_cast %229 : vector<8xf32> to vector<8x1xf32>
    %231 = vector.broadcast %230 : vector<8x1xf32> to vector<8x8xf32>
    %232 = arith.subf %228, %231 : vector<8x8xf32>
    %233 = math.exp %232 : vector<8x8xf32>
    %cst_85 = arith.constant dense<0.000000e+00> : vector<8xf32>
    %234 = vector.multi_reduction <add>, %233, %cst_85 [1] : vector<8x8xf32> to vector<8xf32>
    %235 = vector.shape_cast %234 : vector<8xf32> to vector<8x1xf32>
    %236 = tpu.reciprocal %235 {approx = true} : vector<8x1xf32> -> vector<8x1xf32>
    %237 = vector.broadcast %236 : vector<8x1xf32> to vector<8x8xf32>
    %238 = arith.mulf %233, %237 : vector<8x8xf32>
    %cst_86 = arith.constant dense<0.000000e+00> : vector<8x4xf32>
    %239 = tpu.matmul %238, %225, %cst_86 {dimension_numbers = #tpu.dot_dimension_numbers<[1], [0], [0], [1], [0, 0, 1, 1], [], []>} : vector<8x8xf32>, vector<8x4xf32>, vector<8x4xf32> -> vector<8x4xf32>
    %240 = tpu.concatenate %219, %239 in 1 : vector<8x4xf32>, vector<8x4xf32> -> vector<8x8xf32>
    %241 = vector.extract_strided_slice %199 {offsets = [1, 0, 0], sizes = [1, 8, 4], strides = [1, 1, 1]} : vector<2x8x24xf32> to vector<1x8x4xf32>
    %242 = vector.shape_cast %241 : vector<1x8x4xf32> to vector<8x4xf32>
    %243 = vector.extract_strided_slice %199 {offsets = [1, 0, 8], sizes = [1, 8, 4], strides = [1, 1, 1]} : vector<2x8x24xf32> to vector<1x8x4xf32>
    %244 = vector.shape_cast %243 : vector<1x8x4xf32> to vector<8x4xf32>
    %245 = vector.extract_strided_slice %199 {offsets = [1, 0, 16], sizes = [1, 8, 4], strides = [1, 1, 1]} : vector<2x8x24xf32> to vector<1x8x4xf32>
    %246 = vector.shape_cast %245 : vector<1x8x4xf32> to vector<8x4xf32>
    %cst_87 = arith.constant dense<0.000000e+00> : vector<8x8xf32>
    %247 = tpu.matmul %242, %244, %cst_87 {dimension_numbers = #tpu.dot_dimension_numbers<[1], [1], [0], [0], [0, 0, 1, 0], [], []>} : vector<8x4xf32>, vector<8x4xf32>, vector<8x8xf32> -> vector<8x8xf32>
    %cst_88 = arith.constant 5.000000e-01 : f32
    %248 = vector.broadcast %cst_88 : f32 to vector<8x8xf32>
    %249 = arith.mulf %247, %248 : vector<8x8xf32>
    %cst_89 = arith.constant dense<0xFF800000> : vector<8xf32>
    %250 = vector.multi_reduction <maximumf>, %249, %cst_89 [1] : vector<8x8xf32> to vector<8xf32>
    %251 = vector.shape_cast %250 : vector<8xf32> to vector<8x1xf32>
    %252 = vector.broadcast %251 : vector<8x1xf32> to vector<8x8xf32>
    %253 = arith.subf %249, %252 : vector<8x8xf32>
    %254 = math.exp %253 : vector<8x8xf32>
    %cst_90 = arith.constant dense<0.000000e+00> : vector<8xf32>
    %255 = vector.multi_reduction <add>, %254, %cst_90 [1] : vector<8x8xf32> to vector<8xf32>
    %256 = vector.shape_cast %255 : vector<8xf32> to vector<8x1xf32>
    %257 = tpu.reciprocal %256 {approx = true} : vector<8x1xf32> -> vector<8x1xf32>
    %258 = vector.broadcast %257 : vector<8x1xf32> to vector<8x8xf32>
    %259 = arith.mulf %254, %258 : vector<8x8xf32>
    %cst_91 = arith.constant dense<0.000000e+00> : vector<8x4xf32>
    %260 = tpu.matmul %259, %246, %cst_91 {dimension_numbers = #tpu.dot_dimension_numbers<[1], [0], [0], [1], [0, 0, 1, 1], [], []>} : vector<8x8xf32>, vector<8x4xf32>, vector<8x4xf32> -> vector<8x4xf32>
    %261 = vector.extract_strided_slice %199 {offsets = [1, 0, 4], sizes = [1, 8, 4], strides = [1, 1, 1]} : vector<2x8x24xf32> to vector<1x8x4xf32>
    %262 = vector.shape_cast %261 : vector<1x8x4xf32> to vector<8x4xf32>
    %263 = vector.extract_strided_slice %199 {offsets = [1, 0, 12], sizes = [1, 8, 4], strides = [1, 1, 1]} : vector<2x8x24xf32> to vector<1x8x4xf32>
    %264 = vector.shape_cast %263 : vector<1x8x4xf32> to vector<8x4xf32>
    %265 = vector.extract_strided_slice %199 {offsets = [1, 0, 20], sizes = [1, 8, 4], strides = [1, 1, 1]} : vector<2x8x24xf32> to vector<1x8x4xf32>
    %266 = vector.shape_cast %265 : vector<1x8x4xf32> to vector<8x4xf32>
    %cst_92 = arith.constant dense<0.000000e+00> : vector<8x8xf32>
    %267 = tpu.matmul %262, %264, %cst_92 {dimension_numbers = #tpu.dot_dimension_numbers<[1], [1], [0], [0], [0, 0, 1, 0], [], []>} : vector<8x4xf32>, vector<8x4xf32>, vector<8x8xf32> -> vector<8x8xf32>
    %cst_93 = arith.constant 5.000000e-01 : f32
    %268 = vector.broadcast %cst_93 : f32 to vector<8x8xf32>
    %269 = arith.mulf %267, %268 : vector<8x8xf32>
    %cst_94 = arith.constant dense<0xFF800000> : vector<8xf32>
    %270 = vector.multi_reduction <maximumf>, %269, %cst_94 [1] : vector<8x8xf32> to vector<8xf32>
    %271 = vector.shape_cast %270 : vector<8xf32> to vector<8x1xf32>
    %272 = vector.broadcast %271 : vector<8x1xf32> to vector<8x8xf32>
    %273 = arith.subf %269, %272 : vector<8x8xf32>
    %274 = math.exp %273 : vector<8x8xf32>
    %cst_95 = arith.constant dense<0.000000e+00> : vector<8xf32>
    %275 = vector.multi_reduction <add>, %274, %cst_95 [1] : vector<8x8xf32> to vector<8xf32>
    %276 = vector.shape_cast %275 : vector<8xf32> to vector<8x1xf32>
    %277 = tpu.reciprocal %276 {approx = true} : vector<8x1xf32> -> vector<8x1xf32>
    %278 = vector.broadcast %277 : vector<8x1xf32> to vector<8x8xf32>
    %279 = arith.mulf %274, %278 : vector<8x8xf32>
    %cst_96 = arith.constant dense<0.000000e+00> : vector<8x4xf32>
    %280 = tpu.matmul %279, %266, %cst_96 {dimension_numbers = #tpu.dot_dimension_numbers<[1], [0], [0], [1], [0, 0, 1, 1], [], []>} : vector<8x8xf32>, vector<8x4xf32>, vector<8x4xf32> -> vector<8x4xf32>
    %281 = tpu.concatenate %260, %280 in 1 : vector<8x4xf32>, vector<8x4xf32> -> vector<8x8xf32>
    %282 = tpu.concatenate %240, %281 in 0 : vector<8x8xf32>, vector<8x8xf32> -> vector<16x8xf32>
    %cst_97 = arith.constant dense<0.000000e+00> : vector<16x128xf32>
    %283 = tpu.matmul %282, %183, %cst_97 {dimension_numbers = #tpu.dot_dimension_numbers<[1], [0], [0], [1], [0, 0, 1, 1], [], []>} : vector<16x8xf32>, vector<8x128xf32>, vector<16x128xf32> -> vector<16x128xf32>
    %284 = vector.shape_cast %283 : vector<16x128xf32> to vector<2x8x128xf32>
    %285 = vector.shape_cast %186 : vector<1x128xf32> to vector<1x1x128xf32>
    %286 = vector.broadcast %285 : vector<1x1x128xf32> to vector<2x8x128xf32>
    %287 = arith.addf %284, %286 : vector<2x8x128xf32>
    %288 = arith.addf %179, %287 : vector<2x8x128xf32>
    %cst_98 = arith.constant dense<0.000000e+00> : vector<2x8xf32>
    %289 = vector.multi_reduction <add>, %288, %cst_98 [2] : vector<2x8x128xf32> to vector<2x8xf32>
    %290 = vector.shape_cast %289 : vector<2x8xf32> to vector<2x8x1xf32>
    %cst_99 = arith.constant 1.250000e-01 : f32
    %291 = vector.broadcast %cst_99 : f32 to vector<2x8x1xf32>
    %292 = arith.mulf %290, %291 : vector<2x8x1xf32>
    %293 = vector.broadcast %292 : vector<2x8x1xf32> to vector<2x8x128xf32>
    %294 = arith.subf %288, %293 : vector<2x8x128xf32>
    %295 = vector.broadcast %9 : vector<1x1x128xf32> to vector<2x8x128xf32>
    %296 = arith.mulf %294, %295 : vector<2x8x128xf32>
    %297 = arith.mulf %296, %296 : vector<2x8x128xf32>
    %cst_100 = arith.constant dense<0.000000e+00> : vector<2x8xf32>
    %298 = vector.multi_reduction <add>, %297, %cst_100 [2] : vector<2x8x128xf32> to vector<2x8xf32>
    %299 = vector.shape_cast %298 : vector<2x8xf32> to vector<2x8x1xf32>
    %cst_101 = arith.constant 1.250000e-01 : f32
    %300 = vector.broadcast %cst_101 : f32 to vector<2x8x1xf32>
    %301 = arith.mulf %299, %300 : vector<2x8x1xf32>
    %cst_102 = arith.constant 9.99999997E-7 : f32
    %302 = vector.broadcast %cst_102 : f32 to vector<2x8x1xf32>
    %303 = arith.addf %301, %302 : vector<2x8x1xf32>
    %304 = math.rsqrt %303 : vector<2x8x1xf32>
    %305 = vector.broadcast %304 : vector<2x8x1xf32> to vector<2x8x128xf32>
    %306 = arith.mulf %296, %305 : vector<2x8x128xf32>
    %307 = vector.shape_cast %187 : vector<1x128xf32> to vector<1x1x128xf32>
    %308 = vector.broadcast %307 : vector<1x1x128xf32> to vector<2x8x128xf32>
    %309 = arith.mulf %306, %308 : vector<2x8x128xf32>
    %310 = vector.shape_cast %188 : vector<1x128xf32> to vector<1x1x128xf32>
    %311 = vector.broadcast %310 : vector<1x1x128xf32> to vector<2x8x128xf32>
    %312 = arith.addf %309, %311 : vector<2x8x128xf32>
    %313 = vector.shape_cast %312 : vector<2x8x128xf32> to vector<16x128xf32>
    %cst_103 = arith.constant dense<0.000000e+00> : vector<16x128xf32>
    %314 = tpu.matmul %313, %194, %cst_103 {dimension_numbers = #tpu.dot_dimension_numbers<[1], [0], [0], [1], [0, 0, 1, 1], [], []>} : vector<16x128xf32>, vector<128x128xf32>, vector<16x128xf32> -> vector<16x128xf32>
    %315 = vector.broadcast %189 : vector<1x128xf32> to vector<16x128xf32>
    %316 = arith.addf %314, %315 : vector<16x128xf32>
    %cst_104 = arith.constant 0.000000e+00 : f32
    %317 = vector.broadcast %cst_104 : f32 to vector<16x128xf32>
    %318 = arith.maximumf %316, %317 : vector<16x128xf32>
    %cst_105 = arith.constant dense<0.000000e+00> : vector<16x128xf32>
    %319 = tpu.matmul %318, %196, %cst_105 {dimension_numbers = #tpu.dot_dimension_numbers<[1], [0], [0], [1], [0, 0, 1, 1], [], []>} : vector<16x128xf32>, vector<128x128xf32>, vector<16x128xf32> -> vector<16x128xf32>
    %320 = vector.broadcast %190 : vector<1x128xf32> to vector<16x128xf32>
    %321 = arith.addf %319, %320 : vector<16x128xf32>
    %cst_106 = arith.constant 0.000000e+00 : f32
    %322 = vector.broadcast %cst_106 : f32 to vector<16x128xf32>
    %323 = arith.maximumf %321, %322 : vector<16x128xf32>
    %324 = vector.shape_cast %323 : vector<16x128xf32> to vector<2x8x128xf32>
    %325 = arith.addf %312, %324 : vector<2x8x128xf32>
    %cst_107 = arith.constant dense<0.000000e+00> : vector<2x8xf32>
    %326 = vector.multi_reduction <add>, %325, %cst_107 [2] : vector<2x8x128xf32> to vector<2x8xf32>
    %327 = vector.shape_cast %326 : vector<2x8xf32> to vector<2x8x1xf32>
    %cst_108 = arith.constant 1.250000e-01 : f32
    %328 = vector.broadcast %cst_108 : f32 to vector<2x8x1xf32>
    %329 = arith.mulf %327, %328 : vector<2x8x1xf32>
    %330 = vector.broadcast %329 : vector<2x8x1xf32> to vector<2x8x128xf32>
    %331 = arith.subf %325, %330 : vector<2x8x128xf32>
    %332 = vector.broadcast %9 : vector<1x1x128xf32> to vector<2x8x128xf32>
    %333 = arith.mulf %331, %332 : vector<2x8x128xf32>
    %334 = arith.mulf %333, %333 : vector<2x8x128xf32>
    %cst_109 = arith.constant dense<0.000000e+00> : vector<2x8xf32>
    %335 = vector.multi_reduction <add>, %334, %cst_109 [2] : vector<2x8x128xf32> to vector<2x8xf32>
    %336 = vector.shape_cast %335 : vector<2x8xf32> to vector<2x8x1xf32>
    %cst_110 = arith.constant 1.250000e-01 : f32
    %337 = vector.broadcast %cst_110 : f32 to vector<2x8x1xf32>
    %338 = arith.mulf %336, %337 : vector<2x8x1xf32>
    %cst_111 = arith.constant 9.99999997E-7 : f32
    %339 = vector.broadcast %cst_111 : f32 to vector<2x8x1xf32>
    %340 = arith.addf %338, %339 : vector<2x8x1xf32>
    %341 = math.rsqrt %340 : vector<2x8x1xf32>
    %342 = vector.broadcast %341 : vector<2x8x1xf32> to vector<2x8x128xf32>
    %343 = arith.mulf %333, %342 : vector<2x8x128xf32>
    %344 = vector.shape_cast %191 : vector<1x128xf32> to vector<1x1x128xf32>
    %345 = vector.broadcast %344 : vector<1x1x128xf32> to vector<2x8x128xf32>
    %346 = arith.mulf %343, %345 : vector<2x8x128xf32>
    %347 = vector.shape_cast %192 : vector<1x128xf32> to vector<1x1x128xf32>
    %348 = vector.broadcast %347 : vector<1x1x128xf32> to vector<2x8x128xf32>
    %349 = arith.addf %346, %348 : vector<2x8x128xf32>
    %cst_112 = arith.constant 0.000000e+00 : f32
    %350 = vector.broadcast %cst_112 : f32 to vector<2x64xf32>
    %351 = vector.extract_strided_slice %349 {offsets = [0, 0, 0], sizes = [2, 1, 128], strides = [1, 1, 1]} : vector<2x8x128xf32> to vector<2x1x128xf32>
    %352 = vector.shape_cast %351 : vector<2x1x128xf32> to vector<2x128xf32>
    %c0_113 = arith.constant 0 : index
    %c0_114 = arith.constant 0 : index
    %c0_115 = arith.constant 0 : index
    %353 = vector.load %arg6[%c0_113, %c0_114, %c0_115] : memref<8x128x64xf32, #tpu.memory_space<vmem>>, vector<1x128x64xf32>
    %354 = vector.shape_cast %353 : vector<1x128x64xf32> to vector<128x64xf32>
    %cst_116 = arith.constant dense<0.000000e+00> : vector<2x64xf32>
    %355 = tpu.matmul %352, %354, %cst_116 {dimension_numbers = #tpu.dot_dimension_numbers<[1], [0], [0], [1], [0, 0, 1, 1], [], []>} : vector<2x128xf32>, vector<128x64xf32>, vector<2x64xf32> -> vector<2x64xf32>
    %356 = arith.addf %350, %355 : vector<2x64xf32>
    %357 = vector.extract_strided_slice %349 {offsets = [0, 1, 0], sizes = [2, 1, 128], strides = [1, 1, 1]} : vector<2x8x128xf32> to vector<2x1x128xf32>
    %358 = vector.shape_cast %357 : vector<2x1x128xf32> to vector<2x128xf32>
    %c1_117 = arith.constant 1 : index
    %c0_118 = arith.constant 0 : index
    %c0_119 = arith.constant 0 : index
    %359 = vector.load %arg6[%c1_117, %c0_118, %c0_119] : memref<8x128x64xf32, #tpu.memory_space<vmem>>, vector<1x128x64xf32>
    %360 = vector.shape_cast %359 : vector<1x128x64xf32> to vector<128x64xf32>
    %cst_120 = arith.constant dense<0.000000e+00> : vector<2x64xf32>
    %361 = tpu.matmul %358, %360, %cst_120 {dimension_numbers = #tpu.dot_dimension_numbers<[1], [0], [0], [1], [0, 0, 1, 1], [], []>} : vector<2x128xf32>, vector<128x64xf32>, vector<2x64xf32> -> vector<2x64xf32>
    %362 = arith.addf %356, %361 : vector<2x64xf32>
    %363 = vector.extract_strided_slice %349 {offsets = [0, 2, 0], sizes = [2, 1, 128], strides = [1, 1, 1]} : vector<2x8x128xf32> to vector<2x1x128xf32>
    %364 = vector.shape_cast %363 : vector<2x1x128xf32> to vector<2x128xf32>
    %c2 = arith.constant 2 : index
    %c0_121 = arith.constant 0 : index
    %c0_122 = arith.constant 0 : index
    %365 = vector.load %arg6[%c2, %c0_121, %c0_122] : memref<8x128x64xf32, #tpu.memory_space<vmem>>, vector<1x128x64xf32>
    %366 = vector.shape_cast %365 : vector<1x128x64xf32> to vector<128x64xf32>
    %cst_123 = arith.constant dense<0.000000e+00> : vector<2x64xf32>
    %367 = tpu.matmul %364, %366, %cst_123 {dimension_numbers = #tpu.dot_dimension_numbers<[1], [0], [0], [1], [0, 0, 1, 1], [], []>} : vector<2x128xf32>, vector<128x64xf32>, vector<2x64xf32> -> vector<2x64xf32>
    %368 = arith.addf %362, %367 : vector<2x64xf32>
    %369 = vector.extract_strided_slice %349 {offsets = [0, 3, 0], sizes = [2, 1, 128], strides = [1, 1, 1]} : vector<2x8x128xf32> to vector<2x1x128xf32>
    %370 = vector.shape_cast %369 : vector<2x1x128xf32> to vector<2x128xf32>
    %c3 = arith.constant 3 : index
    %c0_124 = arith.constant 0 : index
    %c0_125 = arith.constant 0 : index
    %371 = vector.load %arg6[%c3, %c0_124, %c0_125] : memref<8x128x64xf32, #tpu.memory_space<vmem>>, vector<1x128x64xf32>
    %372 = vector.shape_cast %371 : vector<1x128x64xf32> to vector<128x64xf32>
    %cst_126 = arith.constant dense<0.000000e+00> : vector<2x64xf32>
    %373 = tpu.matmul %370, %372, %cst_126 {dimension_numbers = #tpu.dot_dimension_numbers<[1], [0], [0], [1], [0, 0, 1, 1], [], []>} : vector<2x128xf32>, vector<128x64xf32>, vector<2x64xf32> -> vector<2x64xf32>
    %374 = arith.addf %368, %373 : vector<2x64xf32>
    %375 = vector.extract_strided_slice %349 {offsets = [0, 4, 0], sizes = [2, 1, 128], strides = [1, 1, 1]} : vector<2x8x128xf32> to vector<2x1x128xf32>
    %376 = vector.shape_cast %375 : vector<2x1x128xf32> to vector<2x128xf32>
    %c4 = arith.constant 4 : index
    %c0_127 = arith.constant 0 : index
    %c0_128 = arith.constant 0 : index
    %377 = vector.load %arg6[%c4, %c0_127, %c0_128] : memref<8x128x64xf32, #tpu.memory_space<vmem>>, vector<1x128x64xf32>
    %378 = vector.shape_cast %377 : vector<1x128x64xf32> to vector<128x64xf32>
    %cst_129 = arith.constant dense<0.000000e+00> : vector<2x64xf32>
    %379 = tpu.matmul %376, %378, %cst_129 {dimension_numbers = #tpu.dot_dimension_numbers<[1], [0], [0], [1], [0, 0, 1, 1], [], []>} : vector<2x128xf32>, vector<128x64xf32>, vector<2x64xf32> -> vector<2x64xf32>
    %380 = arith.addf %374, %379 : vector<2x64xf32>
    %381 = vector.extract_strided_slice %349 {offsets = [0, 5, 0], sizes = [2, 1, 128], strides = [1, 1, 1]} : vector<2x8x128xf32> to vector<2x1x128xf32>
    %382 = vector.shape_cast %381 : vector<2x1x128xf32> to vector<2x128xf32>
    %c5 = arith.constant 5 : index
    %c0_130 = arith.constant 0 : index
    %c0_131 = arith.constant 0 : index
    %383 = vector.load %arg6[%c5, %c0_130, %c0_131] : memref<8x128x64xf32, #tpu.memory_space<vmem>>, vector<1x128x64xf32>
    %384 = vector.shape_cast %383 : vector<1x128x64xf32> to vector<128x64xf32>
    %cst_132 = arith.constant dense<0.000000e+00> : vector<2x64xf32>
    %385 = tpu.matmul %382, %384, %cst_132 {dimension_numbers = #tpu.dot_dimension_numbers<[1], [0], [0], [1], [0, 0, 1, 1], [], []>} : vector<2x128xf32>, vector<128x64xf32>, vector<2x64xf32> -> vector<2x64xf32>
    %386 = arith.addf %380, %385 : vector<2x64xf32>
    %387 = vector.extract_strided_slice %349 {offsets = [0, 6, 0], sizes = [2, 1, 128], strides = [1, 1, 1]} : vector<2x8x128xf32> to vector<2x1x128xf32>
    %388 = vector.shape_cast %387 : vector<2x1x128xf32> to vector<2x128xf32>
    %c6 = arith.constant 6 : index
    %c0_133 = arith.constant 0 : index
    %c0_134 = arith.constant 0 : index
    %389 = vector.load %arg6[%c6, %c0_133, %c0_134] : memref<8x128x64xf32, #tpu.memory_space<vmem>>, vector<1x128x64xf32>
    %390 = vector.shape_cast %389 : vector<1x128x64xf32> to vector<128x64xf32>
    %cst_135 = arith.constant dense<0.000000e+00> : vector<2x64xf32>
    %391 = tpu.matmul %388, %390, %cst_135 {dimension_numbers = #tpu.dot_dimension_numbers<[1], [0], [0], [1], [0, 0, 1, 1], [], []>} : vector<2x128xf32>, vector<128x64xf32>, vector<2x64xf32> -> vector<2x64xf32>
    %392 = arith.addf %386, %391 : vector<2x64xf32>
    %393 = vector.extract_strided_slice %349 {offsets = [0, 7, 0], sizes = [2, 1, 128], strides = [1, 1, 1]} : vector<2x8x128xf32> to vector<2x1x128xf32>
    %394 = vector.shape_cast %393 : vector<2x1x128xf32> to vector<2x128xf32>
    %c7 = arith.constant 7 : index
    %c0_136 = arith.constant 0 : index
    %c0_137 = arith.constant 0 : index
    %395 = vector.load %arg6[%c7, %c0_136, %c0_137] : memref<8x128x64xf32, #tpu.memory_space<vmem>>, vector<1x128x64xf32>
    %396 = vector.shape_cast %395 : vector<1x128x64xf32> to vector<128x64xf32>
    %cst_138 = arith.constant dense<0.000000e+00> : vector<2x64xf32>
    %397 = tpu.matmul %394, %396, %cst_138 {dimension_numbers = #tpu.dot_dimension_numbers<[1], [0], [0], [1], [0, 0, 1, 1], [], []>} : vector<2x128xf32>, vector<128x64xf32>, vector<2x64xf32> -> vector<2x64xf32>
    %398 = arith.addf %392, %397 : vector<2x64xf32>
    %c0_139 = arith.constant 0 : index
    %c0_140 = arith.constant 0 : index
    %399 = vector.load %arg7[%c0_139, %c0_140] : memref<1x64xf32, #tpu.memory_space<vmem>>, vector<1x64xf32>
    %400 = vector.broadcast %399 : vector<1x64xf32> to vector<2x64xf32>
    %401 = arith.addf %398, %400 : vector<2x64xf32>
    %cst_141 = arith.constant 0.000000e+00 : f32
    %402 = vector.broadcast %cst_141 : f32 to vector<2x64xf32>
    %403 = arith.maximumf %401, %402 : vector<2x64xf32>
    %c0_142 = arith.constant 0 : index
    %c0_143 = arith.constant 0 : index
    %404 = vector.load %arg8[%c0_142, %c0_143] : memref<64x4xf32, #tpu.memory_space<vmem>>, vector<64x4xf32>
    %cst_144 = arith.constant dense<0.000000e+00> : vector<2x4xf32>
    %405 = tpu.matmul %403, %404, %cst_144 {dimension_numbers = #tpu.dot_dimension_numbers<[1], [0], [0], [1], [0, 0, 1, 1], [], []>} : vector<2x64xf32>, vector<64x4xf32>, vector<2x4xf32> -> vector<2x4xf32>
    %c0_145 = arith.constant 0 : index
    %c0_146 = arith.constant 0 : index
    %406 = vector.load %arg9[%c0_145, %c0_146] : memref<1x4xf32, #tpu.memory_space<vmem>>, vector<1x4xf32>
    %407 = vector.broadcast %406 : vector<1x4xf32> to vector<2x4xf32>
    %408 = arith.addf %405, %407 : vector<2x4xf32>
    %c0_147 = arith.constant 0 : index
    %c0_148 = arith.constant 0 : index
    %409 = vector.load %arg10[%c0_147, %c0_148] : memref<2x4xf32, #tpu.memory_space<vmem>>, vector<2x4xf32>
    tpu.vector_store %arg10[%c0_147, %c0_148], %408 {strides = array<i32>} : memref<2x4xf32, #tpu.memory_space<vmem>>, vector<2x4xf32>,
    return
  }
}

</mosaic_0001>

<bundles_post_ra>
// kernel: tpu_custom_call.1
= control target key start
LH: loop header
LB: loop body
LE: loop exit
PB: predicated region body
PF: predicated region fallthrough
CT: control target
= control target key end

     0   :  { %v4710_v5 = vmov 0.0   ;;  %vm40_vm0 = vcmask 64512   ;;  %s5877_s0 = inlined_call_operand.vmem [shape: f32[2,8,8], index: 0, kind: input, shape index: {}]   ;;  %s5878_s1 = inlined_call_operand.vmem [shape: f32[2,128,24], index: 1, kind: input, shape index: {}]   ;;  %s5879_s2 = inlined_call_operand.vmem [shape: f32[2,8,128], index: 2, kind: input, shape index: {}]   ;;  %s5880_s3 = inlined_call_operand.vmem [shape: f32[2,8,128], index: 3, kind: input, shape index: {}]   ;;  %s5881_s4 = inlined_call_operand.vmem [shape: f32[2,128,128], index: 4, kind: input, shape index: {}]   ;;  %s5882_s5 = inlined_call_operand.vmem [shape: f32[2,128,128], index: 5, kind: input, shape index: {}]   ;;  %s5883_s6 = inlined_call_operand.vmem [shape: f32[8,128,64], index: 6, kind: input, shape index: {}]   ;;  %s5884_s7 = inlined_call_operand.vmem [shape: f32[1,64], index: 7, kind: input, shape index: {}]   ;;  %s5885_s8 = inlined_call_operand.vmem [shape: f32[64,4], index: 8, kind: input, shape index: {}]   ;;  %s5886_s9 = inlined_call_operand.vmem [shape: f32[1,4], index: 9, kind: input, shape index: {}]   ;;  %s5887_s10 = inlined_call_operand.hbm [shape: f32[2,4], index: 10, kind: output, shape index: {}]  }
   0x1   :  { %v50_v0 = vld [vmem:[%s5878_s1] sm:$0xff]  ;;  %v51_v1 = vld [vmem:[%s5878_s1 + $0x8] sm:$0xff]  ;;  %v52_v2 = vld [vmem:[%s5878_s1 + $0x10] sm:$0xff]  ;;  %36 = vst [vmem:[#allocation2] sm:$0xff] %v4710_v5  ;;  %3668 = vmatprep.subr.mxu1 %v4710_v5 }
   0x2   :  { %v4232_v3 = vpack.c.bf16 %v51_v1, %v50_v0  ;;  %v53_v4 = vld [vmem:[%s5878_s1 + $0x18] sm:$0xff]  ;;  %37 = vst [vmem:[#allocation2 + $0x8] sm:$0xff] %v4710_v5  ;;  %v54_v7 = vld [vmem:[%s5878_s1 + $0x20] sm:$0xff]  ;;  %v55_v8 = vld [vmem:[%s5878_s1 + $0x28] sm:$0xff] }
   0x3   :  { %v4236_v6 = vpack.c.bf16 %v53_v4, %v52_v2  ;;  %v4240_v9 = vpack.c.bf16 %v55_v8, %v54_v7  ;;  %v38_v10 = vld [vmem:[%s5877_s0] sm:$0xff]  ;;  %v39_v11 = vld [vmem:[%s5877_s0 + $0x8] sm:$0xff]  ;;  %v56_v12 = vld [vmem:[%s5878_s1 + $0x30] sm:$0xff] }
   0x4   :  { %4233 = vmatprep.subr.bf16.mxu0 %v4232_v3  ;;  %v57_v13 = vld [vmem:[%s5878_s1 + $0x38] sm:$0xff]  ;;  %41 = vst.msk [vmem:[#allocation2] sm:$0xff] %vm40_vm0, %v38_v10  ;;  %42 = vst.msk [vmem:[#allocation2 + $0x8] sm:$0xff] %vm40_vm0, %v39_v11 }
   0x5   :  { %4235 = vmatpush3.bf16.msra.mxu0 %v4232_v3 }
   0x6   :  { %4237 = vmatprep.subr.bf16.mxu0 %v4236_v6 }
   0x7   :  { %15 = vsyncpa [#allocation4], 0  ;;  %v4244_v14 = vpack.c.bf16 %v57_v13, %v56_v12  ;;  %v58_v15 = vld [vmem:[%s5878_s1 + $0x40] sm:$0xff]  ;;  %v59_v16 = vld [vmem:[%s5878_s1 + $0x48] sm:$0xff]  ;;  %vm4711_vm1 = vmmov 0   ;;  %s4712_s28 = smov 112  }
   0x8   :  { %v4248_v17 = vpack.c.bf16 %v59_v16, %v58_v15  ;;  %v60_v19 = vld [vmem:[%s5878_s1 + $0x50] sm:$0xff]  ;;  %v61_v20 = vld [vmem:[%s5878_s1 + $0x58] sm:$0xff]  ;;  %v62_v22 = vld [vmem:[%s5878_s1 + $0x60] sm:$0xff]  ;;  %3670 = vmatprep.mubr.msk.f32.mxu1 %vm4711_vm1, %v4710_v5  ;;  %s4713_s29 = smov 120   ;;  %s4714_s30 = smov 116   ;;  %vm178_vm2 = vcmask 31744  }
   0x9   :  { %4239 = vmatpush3.bf16.msra.mxu0 %v4236_v6  ;;  %v4252_v21 = vpack.c.bf16 %v61_v20, %v60_v19  ;;  %v63_v23 = vld [vmem:[%s5878_s1 + $0x68] sm:$0xff]  ;;  %v64_v25 = vld [vmem:[%s5878_s1 + $0x70] sm:$0xff]  ;;  %v65_v26 = vld [vmem:[%s5878_s1 + $0x78] sm:$0xff]  ;;  %s4715_s11 = smov 108   ;;  %s4716_s12 = smov 124   ;;  %vm2336_vm4 = vcmask 1041409  }
   0xa   :  { %4241 = vmatprep.subr.bf16.mxu0 %v4240_v9  ;;  %v4256_v24 = vpack.c.bf16 %v63_v23, %v62_v22  ;;  %v4260_v27 = vpack.c.bf16 %v65_v26, %v64_v25  ;;  %s4717_s13 = smov 4   ;;  %vm3058_vm5 = vcmask 523264   ;;  %vm3132_vm6 = vcmask 25600  }
   0xb   :  { %v4816_v18 = vld [vmem:[#allocation2] sm:$0xff]  ;;  %v4837_v28 = vld [vmem:[#allocation2 + $0x8] sm:$0xff] }
   0xc   :  { %3665 = vmatprep.mubr.f32.mxu0 %v4816_v18 }
   0xd   :  { %4243 = vmatpush3.bf16.msra.mxu0 %v4240_v9 }
   0xe   :  { %4245 = vmatprep.subr.bf16.mxu0 %v4244_v14 }
  0x11   :  { %4247 = vmatpush3.bf16.msra.mxu0 %v4244_v14 }
  0x12   :  { %4249 = vmatprep.subr.bf16.mxu0 %v4248_v17 }
  0x15   :  { %4251 = vmatpush3.bf16.msra.mxu0 %v4248_v17 }
  0x16   :  { %4253 = vmatprep.subr.bf16.mxu0 %v4252_v21 }
  0x19   :  { %4255 = vmatpush3.bf16.msra.mxu0 %v4252_v21 }
  0x1a   :  { %4257 = vmatprep.subr.bf16.mxu0 %v4256_v24 }
  0x1d   :  { %4259 = vmatpush3.bf16.msra.mxu0 %v4256_v24 }
  0x1e   :  { %4261 = vmatprep.subr.bf16.mxu0 %v4260_v27 }
  0x21   :  { %4263 = vmatpush3.bf16.msra.mxu0 %v4260_v27 }
  0x24   :  { %3666 = vmatmul.mubr.f32.vlgmr.msra.gmra.mrb[0].mxu0 %v4837_v28 }
  0xf7   :  { %v4842_v29 = vpop.f32.mrb[0].mxu0 }
  0xf8   :  { %v166_v30 = vpop.f32.mrb[1].mxu0 }
  0xf9   :  { %265 = vrot.lane.b32.xlu1 %v166_v30, %s4712_s28  ;;  %176 = vrot.lane.b32.xlu0 %v166_v30, %s4713_s29 }
  0xfd   :  { %343 = vrot.lane.b32.xlu1 %v166_v30, %s4714_s30 }
 0x16b   :  { %v177_v31 = vpop.permute.xlu0 %176  ;;  %v266_v32 = vpop.permute.xlu1 %265 }
 0x16c   :  { %3669 = vmatpush3.xpose.msk.msra.mxu1 %vm178_vm2, %v177_v31 }
 0x16d   :  { %3673 = vmatprep.subr.mxu1 %v4710_v5 }
 0x16f   :  { %3671 = vmatmul.mubr.msk.f32.vlgmr.msra.gmra.mrb[0].mxu1 %vm178_vm2, %v166_v30  ;;  %v344_v42 = vpop.permute.xlu1 %343 }
 0x170   :  { %3674 = vmatpush3.msra.mxu1 %v266_v32  ;;  %3675 = vmatprep.mubr.msk.f32.mxu1 %vm4711_vm1, %v4710_v5 }
 0x171   :  { %3678 = vmatprep.subr.mxu1 %v4710_v5 }
 0x242   :  { %v249_v33 = vpop.f32.mrb[0].mxu1 }
 0x243   :  { %v253_v34 = vmul.f32 0.5, %v249_v33  ;;  %v3672_v35 = vpop.f32.mrb[1].mxu1 }
 0x245   :  { %v254_v36 = vsel %vm40_vm0, %v253_v34, -inf }
 0x246   :  { %255 = vmax.xlane.f32.xlu0 %v254_v36 }
 0x25c   :  { %431 = vrot.lane.b32.xlu0 %v166_v30, %s4715_s11 }
 0x2d3   :  { %v256_v37 = vpop.xlane.xlu0 %255 }
 0x2d4   :  { %v257_v38 = vsub.f32 %v253_v34, %v256_v37 }
 0x2d6   :  { %v258_v39 = vmul.f32 1.442695, %v257_v38 }
 0x2d7   :  { %v432_v47 = vpop.permute.xlu0 %431 }
 0x2d8   :  { %4638 = vpow2.f32 %v258_v39 }
 0x2e2   :  { %v4639_v40 = vpop.eup %4638 }
 0x2e3   :  { %v260_v41 = vsel %vm40_vm0, %v4639_v40, 0.0 }
 0x2e4   :  { %261 = vadd.xlane.f32.xlu1 %v260_v41  ;;  %v45_v41 = vlaneseq }
 0x2f5   :  { %341 = vrot.lane.b32.xlu1 %v166_v30, %s4716_s12 }
 0x371   :  { %v262_v43 = vpop.xlane.xlu1 %261 }
 0x372   :  { %4640 = vrcp.f32 %v262_v43 }
 0x375   :  { %v342_v46 = vpop.permute.xlu1 %341 }
 0x37c   :  { %v4641_v44 = vpop.eup %4640 }
 0x37d   :  { %v264_v45 = vmul.f32 %v4641_v44, %v4639_v40  ;;  %v4919_v44 = vld [vmem:[%s5880_s3] sm:$0xff] }
 0x37f   :  { %3676 = vmatmul.mubr.msk.f32.vlgmr.msra.gmra.mrb[2].mxu1 %vm40_vm0, %v264_v45 }
 0x380   :  { %3679 = vmatpush3.xpose.msk.msra.mxu1 %vm178_vm2, %v344_v42  ;;  %3680 = vmatprep.mubr.msk.f32.mxu1 %vm4711_vm1, %v4710_v5  ;;  %v4913_v42 = vshrl.u32 %v45_v41, 7 }
 0x381   :  { %3683 = vmatprep.subr.mxu1 %v4710_v5 }
 0x382   :  { %v931_v43 = vsub.s32 0, %v4913_v42 }
 0x383   :  { %3681 = vmatmul.mubr.msk.f32.vlgmr.msra.gmra.mrb[4].mxu1 %vm178_vm2, %v342_v46 }
 0x384   :  { %3684 = vmatpush3.msra.mxu1 %v432_v47  ;;  %3685 = vmatprep.mubr.msk.f32.mxu1 %vm4711_vm1, %v4710_v5  ;;  %v932_v45 = vrot.slane %v4919_v44, %v931_v43 }
 0x385   :  { %3688 = vmatprep.subr.mxu1 %v4710_v5 }
 0x452   :  { %v4866_v48 = vpop.f32.mrb[2].mxu1 }
 0x453   :  { %v3677_v49 = vpop.f32.mrb[3].mxu1 }
 0x456   :  { %v415_v50 = vpop.f32.mrb[4].mxu1 }
 0x457   :  { %v419_v51 = vmul.f32 0.5, %v415_v50  ;;  %v3682_v52 = vpop.f32.mrb[5].mxu1 }
 0x458   :  { %v68_v52 = vld [vmem:[%s5881_s4] sm:$0xff] }
 0x459   :  { %v420_v53 = vsel %vm40_vm0, %v419_v51, -inf }
 0x45a   :  { %421 = vmax.xlane.f32.xlu1 %v420_v53  ;;  %v69_v53 = vld [vmem:[%s5881_s4 + $0x8] sm:$0xff] }
 0x46b   :  { %601 = vrot.lane.b32.xlu1 %v4842_v29, %s4712_s28 }
 0x46f   :  { %679 = vrot.lane.b32.xlu1 %v4842_v29, %s4714_s30 }
 0x4e7   :  { %v422_v54 = vpop.xlane.xlu1 %421 }
 0x4e8   :  { %v423_v55 = vsub.f32 %v419_v51, %v422_v54  ;;  %v70_v54 = vld [vmem:[%s5881_s4 + $0x10] sm:$0xff] }
 0x4ea   :  { %v424_v56 = vmul.f32 1.442695, %v423_v55  ;;  %v4264_v55 = vpack.c.bf16 %v69_v53, %v68_v52 }
 0x4eb   :  { %v602_v63 = vpop.permute.xlu1 %601 }
 0x4ec   :  { %4642 = vpow2.f32 %v424_v56  ;;  %v46_v56 = vand.u32 127, %v45_v41  ;;  %v95_v41 = vld [vmem:[%s5882_s5 + $0x58] sm:$0xff] }
 0x4ee   :  { %vm47_vm3 = vcmp.lt.s32.totalorder %v46_v56, 8 }
 0x4ef   :  { %v680_v12 = vpop.permute.xlu1 %679 }
 0x4f6   :  { %v4643_v57 = vpop.eup %4642 }
 0x4f7   :  { %v426_v58 = vsel %vm40_vm0, %v4643_v57, 0.0 }
 0x4f8   :  { %427 = vadd.xlane.f32.xlu0 %v426_v58 }
 0x50e   :  { %513 = vrot.lane.b32.xlu0 %v4842_v29, %s4713_s29 }
 0x585   :  { %v428_v59 = vpop.xlane.xlu0 %427 }
 0x586   :  { %4644 = vrcp.f32 %v428_v59 }
 0x589   :  { %v514_v62 = vpop.permute.xlu0 %513 }
 0x590   :  { %v4645_v60 = vpop.eup %4644 }
 0x591   :  { %v430_v61 = vmul.f32 %v4645_v60, %v4643_v57 }
 0x593   :  { %3686 = vmatmul.mubr.msk.f32.vlgmr.msra.gmra.mrb[6].mxu1 %vm40_vm0, %v430_v61  ;;  %v4939_v61 = vsel %vm47_vm3, 1.0, %v4710_v5 }
 0x594   :  { %3689 = vmatpush3.xpose.msk.msra.mxu1 %vm178_vm2, %v514_v62  ;;  %3690 = vmatprep.mubr.msk.f32.mxu1 %vm4711_vm1, %v4710_v5 }
 0x595   :  { %3693 = vmatprep.subr.mxu1 %v4710_v5 }
 0x597   :  { %3691 = vmatmul.mubr.msk.f32.vlgmr.msra.gmra.mrb[8].mxu1 %vm178_vm2, %v4842_v29 }
 0x598   :  { %3694 = vmatpush3.msra.mxu1 %v602_v63  ;;  %3695 = vmatprep.mubr.msk.f32.mxu1 %vm4711_vm1, %v4710_v5 }
 0x599   :  { %3698 = vmatprep.subr.mxu1 %v4710_v5 }
 0x666   :  { %v503_v0 = vpop.f32.mrb[6].mxu1 }
 0x667   :  { %v3687_v1 = vpop.f32.mrb[7].mxu1 }
 0x66a   :  { %v585_v2 = vpop.f32.mrb[8].mxu1 }
 0x66b   :  { %v589_v3 = vmul.f32 0.5, %v585_v2  ;;  %v3692_v4 = vpop.f32.mrb[9].mxu1 }
 0x66c   :  { %v72_v4 = vld [vmem:[%s5881_s4 + $0x20] sm:$0xff] }
 0x66d   :  { %v590_v6 = vsel %vm40_vm0, %v589_v3, -inf }
 0x66e   :  { %591 = vmax.xlane.f32.xlu0 %v590_v6  ;;  %v73_v6 = vld [vmem:[%s5881_s4 + $0x28] sm:$0xff] }
 0x6fb   :  { %v592_v7 = vpop.xlane.xlu0 %591 }
 0x6fc   :  { %v593_v8 = vsub.f32 %v589_v3, %v592_v7  ;;  %v4272_v7 = vpack.c.bf16 %v73_v6, %v72_v4  ;;  %v98_v4 = vld [vmem:[%s5882_s5 + $0x70] sm:$0xff] }
 0x6fe   :  { %v594_v9 = vmul.f32 1.442695, %v593_v8  ;;  %v74_v8 = vld [vmem:[%s5881_s4 + $0x30] sm:$0xff] }
 0x700   :  { %4646 = vpow2.f32 %v594_v9  ;;  %v75_v9 = vld [vmem:[%s5881_s4 + $0x38] sm:$0xff] }
 0x70a   :  { %v4647_v10 = vpop.eup %4646 }
 0x70b   :  { %v596_v11 = vsel %vm40_vm0, %v4647_v10, 0.0 }
 0x70c   :  { %597 = vadd.xlane.f32.xlu1 %v596_v11  ;;  %v76_v11 = vld [vmem:[%s5881_s4 + $0x40] sm:$0xff] }
 0x71d   :  { %677 = vrot.lane.b32.xlu1 %v4842_v29, %s4716_s12 }
 0x799   :  { %v598_v13 = vpop.xlane.xlu1 %597 }
 0x79a   :  { %4648 = vrcp.f32 %v598_v13 }
 0x79d   :  { %v678_v16 = vpop.permute.xlu1 %677 }
 0x7a4   :  { %v4649_v14 = vpop.eup %4648 }
 0x7a5   :  { %v600_v15 = vmul.f32 %v4649_v14, %v4647_v10  ;;  %v4276_v10 = vpack.c.bf16 %v75_v9, %v74_v8  ;;  %v78_v14 = vld [vmem:[%s5881_s4 + $0x50] sm:$0xff] }
 0x7a7   :  { %3696 = vmatmul.mubr.msk.f32.vlgmr.msra.gmra.mrb[10].mxu1 %vm40_vm0, %v600_v15  ;;  %v79_v15 = vld [vmem:[%s5881_s4 + $0x58] sm:$0xff] }
 0x7a8   :  { %3699 = vmatpush3.xpose.msk.msra.mxu1 %vm178_vm2, %v680_v12  ;;  %3700 = vmatprep.mubr.msk.f32.mxu1 %vm4711_vm1, %v4710_v5  ;;  %v77_v12 = vld [vmem:[%s5881_s4 + $0x48] sm:$0xff] }
 0x7a9   :  { %3703 = vmatprep.subr.mxu1 %v4710_v5  ;;  %v4280_v13 = vpack.c.bf16 %v77_v12, %v76_v11 }
 0x7ab   :  { %3701 = vmatmul.mubr.msk.f32.vlgmr.msra.gmra.mrb[12].mxu1 %vm178_vm2, %v678_v16  ;;  %v4284_v16 = vpack.c.bf16 %v79_v15, %v78_v14  ;;  %v1056_v14 = vsub.s32 4, %v4913_v42 }
 0x7ac   :  { %3705 = vmatprep.mubr.msk.f32.mxu1 %vm4711_vm1, %v4710_v5 }
 0x7ad   :  { %v1057_v15 = vrot.slane %v4919_v44, %v1056_v14 }
 0x87a   :  { %v673_v17 = vpop.f32.mrb[10].mxu1 }
 0x87b   :  { %v3697_v19 = vpop.f32.mrb[11].mxu1 }
 0x87c   :  { %v81_v19 = vld [vmem:[%s5881_s4 + $0x68] sm:$0xff] }
 0x87e   :  { %v751_v20 = vpop.f32.mrb[12].mxu1 }
 0x87f   :  { %v755_v21 = vmul.f32 0.5, %v751_v20  ;;  %v3702_v22 = vpop.f32.mrb[13].mxu1 }
 0x880   :  { %v83_v22 = vld [vmem:[%s5881_s4 + $0x78] sm:$0xff] }
 0x881   :  { %v756_v23 = vsel %vm40_vm0, %v755_v21, -inf }
 0x882   :  { %757 = vmax.xlane.f32.xlu1 %v756_v23 }
 0x90f   :  { %v758_v24 = vpop.xlane.xlu1 %757 }
 0x910   :  { %v759_v25 = vsub.f32 %v755_v21, %v758_v24  ;;  %v82_v21 = vld [vmem:[%s5881_s4 + $0x70] sm:$0xff]  ;;  %v84_v24 = vld [vmem:[%s5882_s5] sm:$0xff] }
 0x911   :  { %v4292_v23 = vpack.c.bf16 %v83_v22, %v82_v21 }
 0x912   :  { %v760_v26 = vmul.f32 1.442695, %v759_v25  ;;  %v85_v25 = vld [vmem:[%s5882_s5 + $0x8] sm:$0xff] }
 0x914   :  { %4650 = vpow2.f32 %v760_v26  ;;  %v86_v26 = vld [vmem:[%s5882_s5 + $0x10] sm:$0xff] }
 0x91e   :  { %v4651_v27 = vpop.eup %4650 }
 0x91f   :  { %v762_v30 = vsel %vm40_vm0, %v4651_v27, 0.0 }
 0x920   :  { %763 = vadd.xlane.f32.xlu0 %v762_v30  ;;  %v87_v30 = vld [vmem:[%s5882_s5 + $0x18] sm:$0xff] }
 0x936   :  { %767 = vrot.lane.b32.xlu0 %v4842_v29, %s4715_s11  ;;  %v66_v29 = vld [vmem:[%s5879_s2] sm:$0xff] }
 0x93a   :  { %508 = vrot.lane.b32.xlu0 %v503_v0, %s4717_s13 }
 0x9ad   :  { %v764_v31 = vpop.xlane.xlu0 %763 }
 0x9ae   :  { %4652 = vrcp.f32 %v764_v31  ;;  %v4300_v31 = vpack.c.bf16 %v87_v30, %v86_v26  ;;  %v3164_v26 = vld [vmem:[%s5878_s1 + $0x88] sm:$0xff] }
 0x9b1   :  { %v768_v32 = vpop.permute.xlu0 %767 }
 0x9b2   :  { %3704 = vmatpush3.msra.mxu1 %v768_v32  ;;  %v88_v32 = vld [vmem:[%s5882_s5 + $0x20] sm:$0xff] }
 0x9b3   :  { %3708 = vmatprep.subr.mxu1 %v66_v29 }
 0x9b5   :  { %v509_v34 = vpop.permute.xlu0 %508 }
 0x9b6   :  { %v511_v36 = vsel %vm178_vm2, %v4866_v48, %v509_v34 }
 0x9b8   :  { %v4653_v33 = vpop.eup %4652 }
 0x9b9   :  { %v766_v35 = vmul.f32 %v4653_v33, %v4651_v27  ;;  %v4296_v27 = vpack.c.bf16 %v85_v25, %v84_v24  ;;  %v89_v33 = vld [vmem:[%s5882_s5 + $0x28] sm:$0xff]  ;;  %v3163_v25 = vld [vmem:[%s5878_s1 + $0x80] sm:$0xff] }
 0x9ba   :  { %v4304_v34 = vpack.c.bf16 %v89_v33, %v88_v32  ;;  %v4328_v30 = vpack.c.bf16 %v3164_v26, %v3163_v25 }
 0x9bb   :  { %3706 = vmatmul.mubr.msk.f32.vlgmr.msra.gmra.mrb[14].mxu1 %vm40_vm0, %v766_v35  ;;  %4297 = vmatprep.subr.bf16.mxu0 %v4296_v27  ;;  %v90_v35 = vld [vmem:[%s5882_s5 + $0x30] sm:$0xff] }
 0x9bc   :  { %3710 = vmatprep.mubr.msk.f32.mxu1 %vm40_vm0, %v511_v36  ;;  %3709 = vmatpush3.msra.mxu1 %v66_v29  ;;  %v91_v36 = vld [vmem:[%s5882_s5 + $0x38] sm:$0xff] }
 0x9bd   :  { %4265 = vmatprep.subr.bf16.mxu1 %v4264_v55  ;;  %4299 = vmatpush3.bf16.msra.mxu0 %v4296_v27  ;;  %v4308_v29 = vpack.c.bf16 %v91_v36, %v90_v35  ;;  %v3165_v27 = vld [vmem:[%s5878_s1 + $0x90] sm:$0xff] }
 0x9be   :  { %4301 = vmatprep.subr.bf16.mxu0 %v4300_v31 }
 0x9c1   :  { %4303 = vmatpush3.bf16.msra.mxu0 %v4300_v31  ;;  %v3166_v31 = vld [vmem:[%s5878_s1 + $0x98] sm:$0xff] }
 0x9c2   :  { %4305 = vmatprep.subr.bf16.mxu0 %v4304_v34  ;;  %v4332_v32 = vpack.c.bf16 %v3166_v31, %v3165_v27 }
 0x9c5   :  { %4307 = vmatpush3.bf16.msra.mxu0 %v4304_v34 }
 0x9c6   :  { %4309 = vmatprep.subr.bf16.mxu0 %v4308_v29 }
 0x9c9   :  { %4311 = vmatpush3.bf16.msra.mxu0 %v4308_v29 }
 0xa8e   :  { %v839_v37 = vpop.f32.mrb[14].mxu1 }
 0xa8f   :  { %844 = vrot.lane.b32.xlu0 %v839_v37, %s4717_s13  ;;  %v3707_v38 = vpop.f32.mrb[15].mxu1  ;;  %v92_v37 = vld [vmem:[%s5882_s5 + $0x40] sm:$0xff] }
 0xa90   :  { %v93_v38 = vld [vmem:[%s5882_s5 + $0x48] sm:$0xff] }
 0xb01   :  { %v845_v39 = vpop.permute.xlu0 %844 }
 0xb02   :  { %v847_v40 = vsel %vm178_vm2, %v673_v17, %v845_v39  ;;  %v80_v17 = vld [vmem:[%s5881_s4 + $0x60] sm:$0xff]  ;;  %v4312_v39 = vpack.c.bf16 %v93_v38, %v92_v37 }
 0xb03   :  { %3711 = vmatmul.mubr.msk.f32.vlgmr.msra.gmra.mrb[16].mxu1 %vm40_vm0, %v847_v40  ;;  %v4288_v20 = vpack.c.bf16 %v81_v19, %v80_v17  ;;  %v94_v40 = vld [vmem:[%s5882_s5 + $0x50] sm:$0xff] }
 0xb04   :  { %4267 = vmatpush3.bf16.msra.mxu1 %v4264_v55  ;;  %4313 = vmatprep.subr.bf16.mxu0 %v4312_v39  ;;  %v963_v55 = vsub.s32 1, %v4913_v42 }
 0xb05   :  { %4315 = vmatpush3.bf16.msra.mxu0 %v4312_v39 }
 0xbd6   :  { %v3712_v46 = vpop.f32.mrb[16].mxu1 }
 0xbd7   :  { %v934_v47 = vadd.f32 %v3712_v46, %v932_v45  ;;  %v920_v48 = vpop.f32.mrb[17].mxu1  ;;  %v96_v46 = vld [vmem:[%s5882_s5 + $0x60] sm:$0xff] }
 0xbd8   :  { %v933_v49 = vadd.f32 %v932_v45, %v920_v48  ;;  %v4316_v45 = vpack.c.bf16 %v95_v41, %v94_v40 }
 0xbd9   :  { %v936_v50 = vadd.f32 %v934_v47, %v4837_v28  ;;  %v71_v28 = vld [vmem:[%s5881_s4 + $0x18] sm:$0xff]  ;;  %v97_v47 = vld [vmem:[%s5882_s5 + $0x68] sm:$0xff] }
 0xbda   :  { %v935_v51 = vadd.f32 %v933_v49, %v4816_v18  ;;  %v4268_v18 = vpack.c.bf16 %v71_v28, %v70_v54  ;;  %4317 = vmatprep.subr.bf16.mxu0 %v4316_v45  ;;  %v4320_v48 = vpack.c.bf16 %v97_v47, %v96_v46  ;;  %v969_v28 = vsub.s32 2, %v4913_v42  ;;  %v3168_v46 = vld [vmem:[%s5878_s1 + $0xa8] sm:$0xff] }
 0xbdb   :  { %939 = vadd.xlane.f32.xlu1 %v936_v50  ;;  %4319 = vmatpush3.bf16.msra.mxu0 %v4316_v45  ;;  %v3167_v45 = vld [vmem:[%s5878_s1 + $0xa0] sm:$0xff] }
 0xbdc   :  { %937 = vadd.xlane.f32.xlu0 %v935_v51  ;;  %4269 = vmatprep.subr.bf16.mxu1 %v4268_v18  ;;  %v4336_v47 = vpack.c.bf16 %v3168_v46, %v3167_v45 }
 0xbdd   :  { %4271 = vmatpush3.bf16.msra.mxu1 %v4268_v18  ;;  %4321 = vmatprep.subr.bf16.mxu0 %v4320_v48  ;;  %v964_v18 = vrot.slane %v4919_v44, %v963_v55 }
 0xbde   :  { %4273 = vmatprep.subr.bf16.mxu1 %v4272_v7 }
 0xbdf   :  { %4323 = vmatpush3.bf16.msra.mxu0 %v4320_v48  ;;  %v3169_v48 = vld [vmem:[%s5878_s1 + $0xb0] sm:$0xff] }
 0xbe1   :  { %4275 = vmatpush3.bf16.msra.mxu1 %v4272_v7  ;;  %v975_v7 = vsub.s32 3, %v4913_v42 }
 0xbe2   :  { %4277 = vmatprep.subr.bf16.mxu1 %v4276_v10 }
 0xbe5   :  { %4279 = vmatpush3.bf16.msra.mxu1 %v4276_v10 }
 0xbe6   :  { %4281 = vmatprep.subr.bf16.mxu1 %v4280_v13 }
 0xbe9   :  { %4283 = vmatpush3.bf16.msra.mxu1 %v4280_v13 }
 0xbea   :  { %4285 = vmatprep.subr.bf16.mxu1 %v4284_v16 }
 0xbed   :  { %4287 = vmatpush3.bf16.msra.mxu1 %v4284_v16 }
 0xbee   :  { %4289 = vmatprep.subr.bf16.mxu1 %v4288_v20 }
 0xbf1   :  { %4291 = vmatpush3.bf16.msra.mxu1 %v4288_v20 }
 0xbf2   :  { %4293 = vmatprep.subr.bf16.mxu1 %v4292_v23 }
 0xbf5   :  { %4295 = vmatpush3.bf16.msra.mxu1 %v4292_v23 }
 0xbf6   :  { %4329 = vmatprep.subr.bf16.mxu1 %v4328_v30 }
 0xc68   :  { %v940_v57 = vpop.xlane.xlu1 %939 }
 0xc69   :  { %v942_v58 = vmul.f32 0.125, %v940_v57  ;;  %v938_v59 = vpop.xlane.xlu0 %937 }
 0xc6a   :  { %v941_v60 = vmul.f32 0.125, %v938_v59 }
 0xc6b   :  { %v944_v62 = vsub.f32 %v936_v50, %v942_v58  ;;  %v970_v58 = vrot.slane %v4919_v44, %v969_v28 }
 0xc6c   :  { %v943_v63 = vsub.f32 %v935_v51, %v941_v60 }
 0xc6d   :  { %v4947_v2 = vmul.f32 %v4939_v61, %v944_v62 }
 0xc6e   :  { %v4942_v0 = vmul.f32 %v4939_v61, %v943_v63 }
 0xc6f   :  { %v948_v3 = vmul.f32 %v4947_v2, %v4947_v2 }
 0xc70   :  { %v947_v1 = vmul.f32 %v4942_v0, %v4942_v0 }
 0xc72   :  { %949 = vadd.xlane.f32.xlu1 %v947_v1 }
 0xc76   :  { %951 = vadd.xlane.f32.xlu1 %v948_v3 }
 0xcff   :  { %v950_v49 = vpop.xlane.xlu1 %949 }
 0xd00   :  { %v953_v50 = vmul.f32 0.125, %v950_v49  ;;  %v3170_v49 = vld [vmem:[%s5878_s1 + $0xb8] sm:$0xff] }
 0xd02   :  { %v955_v51 = vadd.f32 1e-06, %v953_v50  ;;  %v4340_v50 = vpack.c.bf16 %v3170_v49, %v3169_v48 }
 0xd03   :  { %v952_v52 = vpop.xlane.xlu1 %951 }
 0xd04   :  { %4654 = vrsqrt.f32 %v955_v51  ;;  %v954_v53 = vmul.f32 0.125, %v952_v52  ;;  %v3171_v51 = vld [vmem:[%s5878_s1 + $0xc0] sm:$0xff]  ;;  %v3172_v52 = vld [vmem:[%s5878_s1 + $0xc8] sm:$0xff] }
 0xd06   :  { %v956_v54 = vadd.f32 1e-06, %v954_v53  ;;  %v4344_v53 = vpack.c.bf16 %v3172_v52, %v3171_v51 }
 0xd08   :  { %4656 = vrsqrt.f32 %v956_v54  ;;  %v3173_v54 = vld [vmem:[%s5878_s1 + $0xd0] sm:$0xff] }
 0xd0e   :  { %v4655_v56 = vpop.eup %4654 }
 0xd0f   :  { %v959_v57 = vmul.f32 %v4655_v56, %v4942_v0  ;;  %v99_v0 = vld [vmem:[%s5882_s5 + $0x78] sm:$0xff] }
 0xd10   :  { %v4324_v6 = vpack.c.bf16 %v99_v0, %v98_v4 }
 0xd11   :  { %v965_v59 = vmul.f32 %v964_v18, %v959_v57  ;;  %v3175_v57 = vld [vmem:[%s5878_s1 + $0xe0] sm:$0xff] }
 0xd12   :  { %v4657_v60 = vpop.eup %4656  ;;  %4325 = vmatprep.subr.bf16.mxu0 %v4324_v6 }
 0xd13   :  { %v971_v62 = vadd.f32 %v970_v58, %v965_v59  ;;  %v960_v63 = vmul.f32 %v4657_v60, %v4947_v2  ;;  %4327 = vmatpush3.bf16.msra.mxu0 %v4324_v6  ;;  %v976_v2 = vrot.slane %v4919_v44, %v975_v7  ;;  %v3177_v60 = vld [vmem:[%s5878_s1 + $0xf0] sm:$0xff] }
 0xd14   :  { %3823 = vmatprep.subr.mxu0 %v4710_v5 }
 0xd15   :  { %3745 = vmatprep.mubr.f32.mxu1 %v971_v62  ;;  %v966_v1 = vmul.f32 %v964_v18, %v960_v63  ;;  %v3174_v18 = vld [vmem:[%s5878_s1 + $0xd8] sm:$0xff] }
 0xd16   :  { %v4348_v56 = vpack.c.bf16 %v3174_v18, %v3173_v54 }
 0xd17   :  { %v972_v3 = vadd.f32 %v970_v58, %v966_v1  ;;  %v3176_v58 = vld [vmem:[%s5878_s1 + $0xe8] sm:$0xff] }
 0xd18   :  { %v4352_v59 = vpack.c.bf16 %v3176_v58, %v3175_v57 }
 0xd19   :  { %3746 = vmatmul.mubr.f32.vlgmr.msra.gmra.mrb[18].mxu1 %v972_v3 }
 0xd1a   :  { %4331 = vmatpush3.bf16.msra.mxu1 %v4328_v30 }
 0xd1b   :  { %4333 = vmatprep.subr.bf16.mxu1 %v4332_v32 }
 0xd1e   :  { %4335 = vmatpush3.bf16.msra.mxu1 %v4332_v32 }
 0xd1f   :  { %4337 = vmatprep.subr.bf16.mxu1 %v4336_v47 }
 0xd22   :  { %4339 = vmatpush3.bf16.msra.mxu1 %v4336_v47 }
 0xd23   :  { %4341 = vmatprep.subr.bf16.mxu1 %v4340_v50 }
 0xd26   :  { %4343 = vmatpush3.bf16.msra.mxu1 %v4340_v50 }
 0xd27   :  { %4345 = vmatprep.subr.bf16.mxu1 %v4344_v53 }
 0xd2a   :  { %4347 = vmatpush3.bf16.msra.mxu1 %v4344_v53 }
 0xd2b   :  { %4349 = vmatprep.subr.bf16.mxu1 %v4348_v56 }
 0xd2e   :  { %4351 = vmatpush3.bf16.msra.mxu1 %v4348_v56 }
 0xd2f   :  { %4353 = vmatprep.subr.bf16.mxu1 %v4352_v59 }
 0xd32   :  { %4355 = vmatpush3.bf16.msra.mxu1 %v4352_v59 }
 0xdec   :  { %v3747_v8 = vpop.f32.mrb[18].mxu1 }
 0xded   :  { %v1049_v9 = vadd.f32 %v3747_v8, %v976_v2  ;;  %v1043_v10 = vpop.f32.mrb[19].mxu1  ;;  %v1163_v8 = vsub.s32 5, %v4913_v42 }
 0xdee   :  { %v1044_v11 = vadd.f32 %v1043_v10, %v976_v2 }
 0xdef   :  { %v1053_v13 = vmax.f32 %v1049_v9, 0.0  ;;  %v1169_v9 = vsub.s32 6, %v4913_v42  ;;  %v1164_v10 = vrot.slane %v4919_v44, %v1163_v8  ;;  %v3244_v42 = vld [vmem:[%s5883_s6 + $0x108] sm:$0xff] }
 0xdf0   :  { %v1052_v12 = vmax.f32 %v1044_v11, 0.0 }
 0xdf2   :  { %3780 = vmatprep.mubr.f32.mxu0 %v1052_v12 }
 0xdf3   :  { %3781 = vmatmul.mubr.f32.vlgmr.msra.gmra.mrb[2].mxu0 %v1053_v13  ;;  %v1170_v13 = vrot.slane %v4919_v44, %v1169_v9 }
 0xdf4   :  { %3825 = vmatprep.mubr.msk.f32.mxu0 %vm4711_vm1, %v4710_v5 }
 0xec6   :  { %v3782_v16 = vpop.f32.mrb[2].mxu0 }
 0xec7   :  { %v1124_v17 = vpop.f32.mrb[3].mxu0  ;;  %v1130_v19 = vadd.f32 %v3782_v16, %v1057_v15 }
 0xec8   :  { %v1125_v20 = vadd.f32 %v1124_v17, %v1057_v15 }
 0xec9   :  { %v1134_v22 = vmax.f32 %v1130_v19, 0.0 }
 0xeca   :  { %v1133_v21 = vmax.f32 %v1125_v20, 0.0 }
 0xecb   :  { %v1136_v24 = vadd.f32 %v1134_v22, %v972_v3 }
 0xecc   :  { %v1135_v23 = vadd.f32 %v1133_v21, %v971_v62  ;;  %v3178_v62 = vld [vmem:[%s5878_s1 + $0xf8] sm:$0xff] }
 0xecd   :  { %v4356_v63 = vpack.c.bf16 %v3178_v62, %v3177_v60 }
 0xece   :  { %1137 = vadd.xlane.f32.xlu1 %v1135_v23 }
 0xecf   :  { %4357 = vmatprep.subr.bf16.mxu1 %v4356_v63 }
 0xed0   :  { %4359 = vmatpush3.bf16.msra.mxu1 %v4356_v63 }
 0xed1   :  { %3818 = vmatprep.subr.mxu1 %v4710_v5 }
 0xed2   :  { %1139 = vadd.xlane.f32.xlu1 %v1136_v24 }
 0xf5b   :  { %v1138_v33 = vpop.xlane.xlu1 %1137 }
 0xf5c   :  { %v1141_v34 = vmul.f32 0.125, %v1138_v33 }
 0xf5e   :  { %v1143_v35 = vsub.f32 %v1135_v23, %v1141_v34 }
 0xf5f   :  { %v1140_v36 = vpop.xlane.xlu1 %1139 }
 0xf60   :  { %v1142_v29 = vmul.f32 0.125, %v1140_v36  ;;  %v1145_v37 = vmul.f32 %v4939_v61, %v1143_v35 }
 0xf62   :  { %v1144_v38 = vsub.f32 %v1136_v24, %v1142_v29  ;;  %v1147_v39 = vmul.f32 %v1145_v37, %v1145_v37 }
 0xf64   :  { %1149 = vadd.xlane.f32.xlu1 %v1147_v39  ;;  %v1146_v40 = vmul.f32 %v4939_v61, %v1144_v38 }
 0xf66   :  { %v1148_v41 = vmul.f32 %v1146_v40, %v1146_v40 }
 0xf68   :  { %1151 = vadd.xlane.f32.xlu1 %v1148_v41 }
 0xff1   :  { %v1150_v1 = vpop.xlane.xlu1 %1149 }
 0xff2   :  { %v1153_v3 = vmul.f32 0.125, %v1150_v1 }
 0xff4   :  { %v1155_v4 = vadd.f32 1e-06, %v1153_v3 }
 0xff5   :  { %v1152_v0 = vpop.xlane.xlu1 %1151 }
 0xff6   :  { %4658 = vrsqrt.f32 %v1155_v4  ;;  %v1154_v6 = vmul.f32 0.125, %v1152_v0 }
 0xff8   :  { %v1156_v2 = vadd.f32 1e-06, %v1154_v6 }
 0xffa   :  { %4660 = vrsqrt.f32 %v1156_v2 }
0x1000   :  { %v4659_v11 = vpop.eup %4658 }
0x1001   :  { %v1159_v12 = vmul.f32 %v4659_v11, %v1145_v37 }
0x1003   :  { %v1165_v15 = vmul.f32 %v1164_v10, %v1159_v12 }
0x1004   :  { %v4661_v16 = vpop.eup %4660 }
0x1005   :  { %v5115_v17 = vadd.f32 %v1170_v13, %v1165_v15  ;;  %v1160_v19 = vmul.f32 %v4661_v16, %v1146_v40 }
0x1007   :  { %3815 = vmatprep.mubr.f32.mxu1 %v5115_v17  ;;  %v1166_v20 = vmul.f32 %v1164_v10, %v1160_v19 }
0x1009   :  { %v5118_v21 = vadd.f32 %v1170_v13, %v1166_v20 }
0x100b   :  { %3816 = vmatmul.mubr.f32.vlgmr.msra.gmra.mrb[20].mxu1 %v5118_v21 }
0x100c   :  { %3820 = vmatprep.mubr.msk.f32.mxu1 %vm4711_vm1, %v4710_v5 }
0x10de   :  { %v5123_v22 = vpop.f32.mrb[20].mxu1 }
0x10df   :  { %v1294_v23 = vpop.f32.mrb[21].mxu1 }
0x10e0   :  { %1304 = vrot.lane.b32.xlu1 %v1294_v23, %s4713_s29 }
0x10e4   :  { %1470 = vrot.lane.b32.xlu1 %v1294_v23, %s4714_s30 }
0x10e8   :  { %1468 = vrot.lane.b32.xlu1 %v1294_v23, %s4716_s12 }
0x1152   :  { %v1305_v44 = vpop.permute.xlu1 %1304 }
0x1153   :  { %3819 = vmatpush3.xpose.msk.msra.mxu1 %vm178_vm2, %v1305_v44 }
0x1156   :  { %3821 = vmatmul.mubr.msk.f32.vlgmr.msra.gmra.mrb[22].mxu1 %vm178_vm2, %v1294_v23  ;;  %v1471_v37 = vpop.permute.xlu1 %1470 }
0x115a   :  { %v1469_v39 = vpop.permute.xlu1 %1468 }
0x1229   :  { %v1376_v24 = vpop.f32.mrb[22].mxu1 }
0x122a   :  { %v1380_v25 = vmul.f32 0.5, %v1376_v24  ;;  %v3822_v26 = vpop.f32.mrb[23].mxu1 }
0x122c   :  { %v1381_v27 = vsel %vm40_vm0, %v1380_v25, -inf }
0x122d   :  { %1382 = vmax.xlane.f32.xlu0 %v1381_v27 }
0x12ba   :  { %v1383_v30 = vpop.xlane.xlu0 %1382 }
0x12bb   :  { %v1384_v31 = vsub.f32 %v1380_v25, %v1383_v30 }
0x12bd   :  { %v1385_v32 = vmul.f32 1.442695, %v1384_v31 }
0x12bf   :  { %4662 = vpow2.f32 %v1385_v32 }
0x12c9   :  { %v4663_v33 = vpop.eup %4662 }
0x12ca   :  { %v1387_v34 = vsel %vm40_vm0, %v4663_v33, 0.0 }
0x12cb   :  { %1388 = vadd.xlane.f32.xlu0 %v1387_v34 }
0x12e1   :  { %1392 = vrot.lane.b32.xlu0 %v1294_v23, %s4712_s28 }
0x1358   :  { %v1389_v35 = vpop.xlane.xlu0 %1388 }
0x1359   :  { %4664 = vrcp.f32 %v1389_v35 }
0x135c   :  { %v1393_v36 = vpop.permute.xlu0 %1392 }
0x135d   :  { %3824 = vmatpush3.msra.mxu0 %v1393_v36 }
0x135e   :  { %3828 = vmatprep.subr.mxu0 %v4710_v5 }
0x1363   :  { %v4665_v29 = vpop.eup %4664 }
0x1364   :  { %v1391_v38 = vmul.f32 %v4665_v29, %v4663_v33 }
0x1366   :  { %3826 = vmatmul.mubr.msk.f32.vlgmr.msra.gmra.mrb[4].mxu0 %vm40_vm0, %v1391_v38 }
0x1367   :  { %3829 = vmatpush3.xpose.msk.msra.mxu0 %vm178_vm2, %v1471_v37  ;;  %3830 = vmatprep.mubr.msk.f32.mxu0 %vm4711_vm1, %v4710_v5 }
0x1368   :  { %3833 = vmatprep.subr.mxu0 %v4710_v5 }
0x136a   :  { %3831 = vmatmul.mubr.msk.f32.vlgmr.msra.gmra.mrb[6].mxu0 %vm178_vm2, %v1469_v39  ;;  %v3179_v39 = vld [vmem:[%s5879_s2 + $0x8] sm:$0xff] }
0x136b   :  { %3835 = vmatprep.mubr.msk.f32.mxu0 %vm4711_vm1, %v4710_v5  ;;  %3858 = vmatprep.subr.mxu1 %v3179_v39 }
0x136c   :  { %3859 = vmatpush3.msra.mxu1 %v3179_v39 }
0x1439   :  { %v5142_v40 = vpop.f32.mrb[4].mxu0 }
0x143a   :  { %v3827_v41 = vpop.f32.mrb[5].mxu0 }
0x143d   :  { %v1542_v45 = vpop.f32.mrb[6].mxu0 }
0x143e   :  { %v1546_v46 = vmul.f32 0.5, %v1542_v45  ;;  %v3832_v47 = vpop.f32.mrb[7].mxu0 }
0x1440   :  { %v1547_v48 = vsel %vm40_vm0, %v1546_v46, -inf }
0x1441   :  { %1548 = vmax.xlane.f32.xlu1 %v1547_v48 }
0x1452   :  { %1558 = vrot.lane.b32.xlu1 %v1294_v23, %s4715_s11 }
0x14ce   :  { %v1549_v49 = vpop.xlane.xlu1 %1548 }
0x14cf   :  { %v1550_v50 = vsub.f32 %v1546_v46, %v1549_v49  ;;  %v5194_v46 = vld [vmem:[%s5880_s3 + $0x8] sm:$0xff] }
0x14d0   :  { %v2059_v47 = vrot.slane %v5194_v46, %v931_v43  ;;  %v3183_v43 = vld [vmem:[%s5881_s4 + $0x90] sm:$0xff] }
0x14d1   :  { %v1551_v51 = vmul.f32 1.442695, %v1550_v50 }
0x14d2   :  { %v1559_v52 = vpop.permute.xlu1 %1558 }
0x14d3   :  { %4666 = vpow2.f32 %v1551_v51  ;;  %3834 = vmatpush3.msra.mxu0 %v1559_v52 }
0x14d4   :  { %3838 = vmatprep.subr.mxu0 %v4710_v5 }
0x14dd   :  { %v4667_v53 = vpop.eup %4666 }
0x14de   :  { %v1553_v54 = vsel %vm40_vm0, %v4667_v53, 0.0 }
0x14df   :  { %1554 = vadd.xlane.f32.xlu0 %v1553_v54  ;;  %v3181_v54 = vld [vmem:[%s5881_s4 + $0x80] sm:$0xff] }
0x14f5   :  { %1640 = vrot.lane.b32.xlu0 %v5123_v22, %s4713_s29 }
0x156c   :  { %v1555_v18 = vpop.xlane.xlu0 %1554 }
0x156d   :  { %4668 = vrcp.f32 %v1555_v18  ;;  %v3182_v18 = vld [vmem:[%s5881_s4 + $0x88] sm:$0xff] }
0x1570   :  { %v1641_v58 = vpop.permute.xlu0 %1640 }
0x1577   :  { %v4669_v56 = vpop.eup %4668 }
0x1578   :  { %v1557_v57 = vmul.f32 %v4669_v56, %v4667_v53  ;;  %v4360_v56 = vpack.c.bf16 %v3182_v18, %v3181_v54 }
0x157a   :  { %3836 = vmatmul.mubr.msk.f32.vlgmr.msra.gmra.mrb[8].mxu0 %vm40_vm0, %v1557_v57 }
0x157b   :  { %3839 = vmatpush3.xpose.msk.msra.mxu0 %vm178_vm2, %v1641_v58  ;;  %3840 = vmatprep.mubr.msk.f32.mxu0 %vm4711_vm1, %v4710_v5 }
0x157c   :  { %3843 = vmatprep.subr.mxu0 %v4710_v5 }
0x157e   :  { %3841 = vmatmul.mubr.msk.f32.vlgmr.msra.gmra.mrb[10].mxu0 %vm178_vm2, %v5123_v22 }
0x157f   :  { %3845 = vmatprep.mubr.msk.f32.mxu0 %vm4711_vm1, %v4710_v5 }
0x164d   :  { %v1630_v59 = vpop.f32.mrb[8].mxu0 }
0x164e   :  { %v3837_v60 = vpop.f32.mrb[9].mxu0 }
0x1651   :  { %v1712_v62 = vpop.f32.mrb[10].mxu0 }
0x1652   :  { %v1716_v63 = vmul.f32 0.5, %v1712_v62  ;;  %v3842_v1 = vpop.f32.mrb[11].mxu0 }
0x1654   :  { %v1717_v3 = vsel %vm40_vm0, %v1716_v63, -inf }
0x1655   :  { %1718 = vmax.xlane.f32.xlu1 %v1717_v3 }
0x1666   :  { %1728 = vrot.lane.b32.xlu1 %v5123_v22, %s4712_s28 }
0x166a   :  { %1804 = vrot.lane.b32.xlu1 %v5123_v22, %s4716_s12  ;;  %s4719_s12 = smov [#allocation3]  }
0x16e2   :  { %v1719_v4 = vpop.xlane.xlu1 %1718 }
0x16e3   :  { %v1720_v0 = vsub.f32 %v1716_v63, %v1719_v4 }
0x16e5   :  { %v1721_v6 = vmul.f32 1.442695, %v1720_v0 }
0x16e6   :  { %v1729_v2 = vpop.permute.xlu1 %1728 }
0x16e7   :  { %4670 = vpow2.f32 %v1721_v6  ;;  %3844 = vmatpush3.msra.mxu0 %v1729_v2  ;;  %v3185_v6 = vld [vmem:[%s5881_s4 + $0xa0] sm:$0xff]  ;;  %v3186_v2 = vld [vmem:[%s5881_s4 + $0xa8] sm:$0xff] }
0x16e8   :  { %3848 = vmatprep.subr.mxu0 %v4710_v5 }
0x16ea   :  { %v1805_v19 = vpop.permute.xlu1 %1804 }
0x16f1   :  { %v4671_v10 = vpop.eup %4670 }
0x16f2   :  { %v1723_v11 = vsel %vm40_vm0, %v4671_v10, 0.0 }
0x16f3   :  { %1724 = vadd.xlane.f32.xlu0 %v1723_v11  ;;  %v3187_v11 = vld [vmem:[%s5881_s4 + $0xb0] sm:$0xff] }
0x1709   :  { %1806 = vrot.lane.b32.xlu0 %v5123_v22, %s4714_s30 }
0x1780   :  { %v1725_v12 = vpop.xlane.xlu0 %1724 }
0x1781   :  { %4672 = vrcp.f32 %v1725_v12  ;;  %v3188_v12 = vld [vmem:[%s5881_s4 + $0xb8] sm:$0xff] }
0x1784   :  { %v1807_v16 = vpop.permute.xlu0 %1806 }
0x178b   :  { %v4673_v13 = vpop.eup %4672 }
0x178c   :  { %v1727_v15 = vmul.f32 %v4673_v13, %v4671_v10  ;;  %v4368_v10 = vpack.c.bf16 %v3186_v2, %v3185_v6  ;;  %v4372_v13 = vpack.c.bf16 %v3188_v12, %v3187_v11 }
0x178e   :  { %3846 = vmatmul.mubr.msk.f32.vlgmr.msra.gmra.mrb[12].mxu0 %vm40_vm0, %v1727_v15  ;;  %v3189_v15 = vld [vmem:[%s5881_s4 + $0xc0] sm:$0xff] }
0x178f   :  { %3849 = vmatpush3.xpose.msk.msra.mxu0 %vm178_vm2, %v1807_v16  ;;  %3850 = vmatprep.mubr.msk.f32.mxu0 %vm4711_vm1, %v4710_v5  ;;  %v3190_v16 = vld [vmem:[%s5881_s4 + $0xc8] sm:$0xff] }
0x1790   :  { %3853 = vmatprep.subr.mxu0 %v4710_v5 }
0x1792   :  { %3851 = vmatmul.mubr.msk.f32.vlgmr.msra.gmra.mrb[14].mxu0 %vm178_vm2, %v1805_v19  ;;  %v4376_v19 = vpack.c.bf16 %v3190_v16, %v3189_v15 }
0x1793   :  { %3855 = vmatprep.mubr.msk.f32.mxu0 %vm4711_vm1, %v4710_v5 }
0x1861   :  { %v1800_v20 = vpop.f32.mrb[12].mxu0 }
0x1862   :  { %v3847_v23 = vpop.f32.mrb[13].mxu0 }
0x1863   :  { %v3192_v23 = vld [vmem:[%s5881_s4 + $0xd8] sm:$0xff] }
0x1865   :  { %v1878_v44 = vpop.f32.mrb[14].mxu0 }
0x1866   :  { %v1882_v24 = vmul.f32 0.5, %v1878_v44  ;;  %v3852_v25 = vpop.f32.mrb[15].mxu0 }
0x1867   :  { %v3194_v25 = vld [vmem:[%s5881_s4 + $0xe8] sm:$0xff] }
0x1868   :  { %v1883_v26 = vsel %vm40_vm0, %v1882_v24, -inf }
0x1869   :  { %1884 = vmax.xlane.f32.xlu1 %v1883_v26 }
0x187a   :  { %1635 = vrot.lane.b32.xlu1 %v1630_v59, %s4717_s13 }
0x18f6   :  { %v1885_v27 = vpop.xlane.xlu1 %1884 }
0x18f7   :  { %v1886_v30 = vsub.f32 %v1882_v24, %v1885_v27  ;;  %v3193_v24 = vld [vmem:[%s5881_s4 + $0xe0] sm:$0xff]  ;;  %v3195_v27 = vld [vmem:[%s5881_s4 + $0xf0] sm:$0xff] }
0x18f8   :  { %v4384_v26 = vpack.c.bf16 %v3194_v25, %v3193_v24 }
0x18f9   :  { %v1887_v31 = vmul.f32 1.442695, %v1886_v30  ;;  %v3196_v30 = vld [vmem:[%s5881_s4 + $0xf8] sm:$0xff] }
0x18fa   :  { %v1636_v32 = vpop.permute.xlu1 %1635 }
0x18fb   :  { %4674 = vpow2.f32 %v1887_v31  ;;  %v1638_v33 = vsel %vm178_vm2, %v5142_v40, %v1636_v32  ;;  %v4388_v31 = vpack.c.bf16 %v3196_v30, %v3195_v27  ;;  %v3197_v32 = vld [vmem:[%s5882_s5 + $0x80] sm:$0xff] }
0x18fc   :  { %3860 = vmatprep.mubr.msk.f32.mxu1 %vm40_vm0, %v1638_v33  ;;  %v3198_v33 = vld [vmem:[%s5882_s5 + $0x88] sm:$0xff] }
0x1905   :  { %v4675_v34 = vpop.eup %4674 }
0x1906   :  { %v1889_v35 = vsel %vm40_vm0, %v4675_v34, 0.0 }
0x1907   :  { %1890 = vadd.xlane.f32.xlu0 %v1889_v35  ;;  %v4392_v35 = vpack.c.bf16 %v3198_v33, %v3197_v32  ;;  %v2301_v32 = vld [vmem:[%s5883_s6 + $0x8] sm:$0xff]  ;;  %v4718_v33 = vmov 0.0|0.0  }
0x1909   :  { %4393 = vmatprep.subr.bf16.mxu1 %v4392_v35 }
0x191d   :  { %1894 = vrot.lane.b32.xlu0 %v5123_v22, %s4715_s11 }
0x1994   :  { %v1891_v36 = vpop.xlane.xlu0 %1890 }
0x1995   :  { %4676 = vrcp.f32 %v1891_v36  ;;  %v3200_v36 = vld [vmem:[%s5882_s5 + $0x98] sm:$0xff] }
0x1998   :  { %v1895_v29 = vpop.permute.xlu0 %1894 }
0x1999   :  { %3854 = vmatpush3.msra.mxu0 %v1895_v29 }
0x199a   :  { %4361 = vmatprep.subr.bf16.mxu0 %v4360_v56 }
0x199f   :  { %v4677_v37 = vpop.eup %4676 }
0x19a0   :  { %v1893_v38 = vmul.f32 %v4677_v37, %v4675_v34  ;;  %v3199_v34 = vld [vmem:[%s5882_s5 + $0x90] sm:$0xff]  ;;  %v3201_v37 = vld [vmem:[%s5882_s5 + $0xa0] sm:$0xff] }
0x19a1   :  { %v4396_v29 = vpack.c.bf16 %v3200_v36, %v3199_v34  ;;  %v2302_v36 = vld [vmem:[%s5883_s6 + $0x10] sm:$0xff] }
0x19a2   :  { %3856 = vmatmul.mubr.msk.f32.vlgmr.msra.gmra.mrb[16].mxu0 %vm40_vm0, %v1893_v38  ;;  %v3202_v38 = vld [vmem:[%s5882_s5 + $0xa8] sm:$0xff] }
0x19a3   :  { %4363 = vmatpush3.bf16.msra.mxu0 %v4360_v56  ;;  %v4400_v39 = vpack.c.bf16 %v3202_v38, %v3201_v37  ;;  %v3229_v38 = vld [vmem:[%s5883_s6 + $0x90] sm:$0xff] }
0x1a75   :  { %v1966_v40 = vpop.f32.mrb[16].mxu0 }
0x1a76   :  { %1971 = vrot.lane.b32.xlu1 %v1966_v40, %s4717_s13  ;;  %v3857_v41 = vpop.f32.mrb[17].mxu0  ;;  %v3203_v40 = vld [vmem:[%s5882_s5 + $0xb0] sm:$0xff]  ;;  %s3140_s13 = sshll.u32 %s4719_s12, 4  ;;  %s3141_s13 = int_to_ptr.vmem [resolvable:$true] %s3140_s13 }
0x1a77   :  { %v3204_v41 = vld [vmem:[%s5882_s5 + $0xb8] sm:$0xff]  ;;  %s4686_s23 = scalar_lea.vmem %s3141_s13, 32  ;;  %p4691_p1 = scmp.lt.s32.totalorder %s3141_s13, %s3141_s13 }
0x1a78   :  { %p4687_p0 = scmp.ne.s32.totalorder %s3141_s13, %s4686_s23  ;;  %p4692_p2 = scmp.lt.s32.totalorder %s4686_s23, %s4686_s23 }
0x1a7a   :  { %p4693_p3 = por %p4692_p2, %p4691_p1 }
0x1a7c   :  { %p4694_p4 = pnand %p4693_p3, %p4687_p0 }
0x1ae8   :  { %v1972_v45 = vpop.permute.xlu1 %1971 }
0x1ae9   :  { %v1974_v22 = vsel %vm178_vm2, %v1800_v20, %v1972_v45  ;;  %v3191_v20 = vld [vmem:[%s5881_s4 + $0xd0] sm:$0xff]  ;;  %v4404_v45 = vpack.c.bf16 %v3204_v41, %v3203_v40 }
0x1aea   :  { %3861 = vmatmul.mubr.msk.f32.vlgmr.msra.gmra.mrb[24].mxu1 %vm40_vm0, %v1974_v22  ;;  %v4380_v44 = vpack.c.bf16 %v3192_v23, %v3191_v20  ;;  %v3205_v22 = vld [vmem:[%s5882_s5 + $0xc0] sm:$0xff]  ;;  %v2184_v20 = vrot.slane %v5194_v46, %v1056_v14 }
0x1aeb   :  { %4395 = vmatpush3.bf16.msra.mxu1 %v4392_v35  ;;  %v3227_v14 = vld [vmem:[%s5883_s6 + $0x80] sm:$0xff]  ;;  %v3228_v35 = vld [vmem:[%s5883_s6 + $0x88] sm:$0xff] }
0x1aec   :  { %4397 = vmatprep.subr.bf16.mxu1 %v4396_v29  ;;  %v4425_v37 = vpack.c.bf16 %v3228_v35, %v3227_v14 }
0x1aef   :  { %4399 = vmatpush3.bf16.msra.mxu1 %v4396_v29  ;;  %v2303_v29 = vld [vmem:[%s5883_s6 + $0x18] sm:$0xff] }
0x1af0   :  { %4401 = vmatprep.subr.bf16.mxu1 %v4400_v39  ;;  %v4452_v40 = vpack.c.bf16 %v2303_v29, %v2302_v36  ;;  %v2291_v29 = vrot.slane %v5194_v46, %v1163_v8  ;;  %v3243_v8 = vld [vmem:[%s5883_s6 + $0x100] sm:$0xff] }
0x1af3   :  { %4403 = vmatpush3.bf16.msra.mxu1 %v4400_v39  ;;  %v3230_v39 = vld [vmem:[%s5883_s6 + $0x98] sm:$0xff] }
0x1af4   :  { %4405 = vmatprep.subr.bf16.mxu1 %v4404_v45  ;;  %v4428_v41 = vpack.c.bf16 %v3230_v39, %v3229_v38  ;;  %v2297_v39 = vrot.slane %v5194_v46, %v1169_v9  ;;  %v3261_v9 = vld [vmem:[%s5883_s6 + $0x190] sm:$0xff] }
0x1af7   :  { %4407 = vmatpush3.bf16.msra.mxu1 %v4404_v45 }
0x1bbd   :  { %v3862_v48 = vpop.f32.mrb[24].mxu1 }
0x1bbe   :  { %v2061_v49 = vadd.f32 %v3862_v48, %v2059_v47  ;;  %v2047_v50 = vpop.f32.mrb[25].mxu1 }
0x1bbf   :  { %v2060_v51 = vadd.f32 %v2059_v47, %v2047_v50  ;;  %v3206_v47 = vld [vmem:[%s5882_s5 + $0xc8] sm:$0xff]  ;;  %v3208_v50 = vld [vmem:[%s5882_s5 + $0xd8] sm:$0xff] }
0x1bc0   :  { %v2063_v52 = vadd.f32 %v2061_v49, %v5118_v21  ;;  %v3184_v21 = vld [vmem:[%s5881_s4 + $0x98] sm:$0xff]  ;;  %v4408_v48 = vpack.c.bf16 %v3206_v47, %v3205_v22  ;;  %v3207_v49 = vld [vmem:[%s5882_s5 + $0xd0] sm:$0xff] }
0x1bc1   :  { %v2062_v53 = vadd.f32 %v2060_v51, %v5115_v17  ;;  %v4364_v17 = vpack.c.bf16 %v3184_v21, %v3183_v43  ;;  %v4412_v51 = vpack.c.bf16 %v3208_v50, %v3207_v49 }
0x1bc2   :  { %2066 = vadd.xlane.f32.xlu1 %v2063_v52  ;;  %4409 = vmatprep.subr.bf16.mxu1 %v4408_v48 }
0x1bc3   :  { %2064 = vadd.xlane.f32.xlu0 %v2062_v53  ;;  %4365 = vmatprep.subr.bf16.mxu0 %v4364_v17 }
0x1bc4   :  { %4367 = vmatpush3.bf16.msra.mxu0 %v4364_v17  ;;  %4411 = vmatpush3.bf16.msra.mxu1 %v4408_v48 }
0x1bc5   :  { %4369 = vmatprep.subr.bf16.mxu0 %v4368_v10  ;;  %4413 = vmatprep.subr.bf16.mxu1 %v4412_v51 }
0x1bc8   :  { %4371 = vmatpush3.bf16.msra.mxu0 %v4368_v10  ;;  %4415 = vmatpush3.bf16.msra.mxu1 %v4412_v51 }
0x1bc9   :  { %4373 = vmatprep.subr.bf16.mxu0 %v4372_v13 }
0x1bcc   :  { %4375 = vmatpush3.bf16.msra.mxu0 %v4372_v13 }
0x1bcd   :  { %4377 = vmatprep.subr.bf16.mxu0 %v4376_v19 }
0x1bd0   :  { %4379 = vmatpush3.bf16.msra.mxu0 %v4376_v19 }
0x1bd1   :  { %4381 = vmatprep.subr.bf16.mxu0 %v4380_v44 }
0x1bd4   :  { %4383 = vmatpush3.bf16.msra.mxu0 %v4380_v44 }
0x1bd5   :  { %4385 = vmatprep.subr.bf16.mxu0 %v4384_v26 }
0x1bd8   :  { %4387 = vmatpush3.bf16.msra.mxu0 %v4384_v26 }
0x1bd9   :  { %4389 = vmatprep.subr.bf16.mxu0 %v4388_v31 }
0x1bdc   :  { %4391 = vmatpush3.bf16.msra.mxu0 %v4388_v31  ;;  %v2300_v31 = vld [vmem:[%s5883_s6] sm:$0xff] }
0x1bdd   :  { %4424 = vmatprep.subr.bf16.mxu0 %v4718_v33  ;;  %v4449_v34 = vpack.c.bf16 %v2301_v32, %v2300_v31 }
0x1c4f   :  { %v2067_v57 = vpop.xlane.xlu1 %2066 }
0x1c50   :  { %v2069_v58 = vmul.f32 0.125, %v2067_v57  ;;  %v2065_v59 = vpop.xlane.xlu0 %2064 }
0x1c51   :  { %v2068_v60 = vmul.f32 0.125, %v2065_v59 }
0x1c52   :  { %v2071_v62 = vsub.f32 %v2063_v52, %v2069_v58  ;;  %v3209_v52 = vld [vmem:[%s5882_s5 + $0xe0] sm:$0xff]  ;;  %v2091_v58 = vrot.slane %v5194_v46, %v963_v55  ;;  %v3211_v55 = vld [vmem:[%s5882_s5 + $0xf0] sm:$0xff] }
0x1c53   :  { %v2070_v63 = vsub.f32 %v2062_v53, %v2068_v60  ;;  %v3210_v53 = vld [vmem:[%s5882_s5 + $0xe8] sm:$0xff] }
0x1c54   :  { %v5219_v4 = vmul.f32 %v4939_v61, %v2071_v62  ;;  %v4416_v54 = vpack.c.bf16 %v3210_v53, %v3209_v52  ;;  %v2097_v62 = vrot.slane %v5194_v46, %v969_v28  ;;  %v3212_v28 = vld [vmem:[%s5882_s5 + $0xf8] sm:$0xff] }
0x1c55   :  { %v5214_v1 = vmul.f32 %v4939_v61, %v2070_v63 }
0x1c56   :  { %v2075_v0 = vmul.f32 %v5219_v4, %v5219_v4  ;;  %4417 = vmatprep.subr.bf16.mxu1 %v4416_v54 }
0x1c57   :  { %v2074_v3 = vmul.f32 %v5214_v1, %v5214_v1  ;;  %4419 = vmatpush3.bf16.msra.mxu1 %v4416_v54 }
0x1c59   :  { %2076 = vadd.xlane.f32.xlu0 %v2074_v3 }
0x1c5d   :  { %2078 = vadd.xlane.f32.xlu0 %v2075_v0 }
0x1ce6   :  { %v2077_v18 = vpop.xlane.xlu0 %2076 }
0x1ce7   :  { %v2080_v43 = vmul.f32 0.125, %v2077_v18  ;;  %v2304_v18 = vld [vmem:[%s5883_s6 + $0x20] sm:$0xff] }
0x1ce9   :  { %v2082_v56 = vadd.f32 1e-06, %v2080_v43  ;;  %v2305_v43 = vld [vmem:[%s5883_s6 + $0x28] sm:$0xff] }
0x1cea   :  { %v2079_v21 = vpop.xlane.xlu0 %2078 }
0x1ceb   :  { %4678 = vrsqrt.f32 %v2082_v56  ;;  %v2081_v17 = vmul.f32 0.125, %v2079_v21  ;;  %v4455_v56 = vpack.c.bf16 %v2305_v43, %v2304_v18  ;;  %v3232_v21 = vld [vmem:[%s5883_s6 + $0xa8] sm:$0xff] }
0x1ced   :  { %v2083_v57 = vadd.f32 1e-06, %v2081_v17 }
0x1cef   :  { %4680 = vrsqrt.f32 %v2083_v57  ;;  %v2306_v57 = vld [vmem:[%s5883_s6 + $0x30] sm:$0xff] }
0x1cf5   :  { %v4679_v59 = vpop.eup %4678 }
0x1cf6   :  { %v2086_v60 = vmul.f32 %v4679_v59, %v5214_v1  ;;  %v4420_v1 = vpack.c.bf16 %v3212_v28, %v3211_v55  ;;  %v2310_v28 = vld [vmem:[%s5883_s6 + $0x50] sm:$0xff] }
0x1cf8   :  { %v2092_v63 = vmul.f32 %v2091_v58, %v2086_v60  ;;  %4421 = vmatprep.subr.bf16.mxu1 %v4420_v1  ;;  %v3233_v60 = vld [vmem:[%s5883_s6 + $0xb0] sm:$0xff] }
0x1cf9   :  { %v4681_v3 = vpop.eup %4680  ;;  %4423 = vmatpush3.bf16.msra.mxu1 %v4420_v1  ;;  %v2311_v1 = vld [vmem:[%s5883_s6 + $0x58] sm:$0xff] }
0x1cfa   :  { %v2098_v0 = vadd.f32 %v2097_v62, %v2092_v63  ;;  %v2087_v6 = vmul.f32 %v4681_v3, %v5219_v4  ;;  %v2103_v4 = vrot.slane %v5194_v46, %v975_v7  ;;  %4448 = vmatprep.subr.bf16.mxu1 %v4718_v33  ;;  %v2308_v3 = vld [vmem:[%s5883_s6 + $0x40] sm:$0xff]  ;;  %v3262_v46 = vld [vmem:[%s5883_s6 + $0x198] sm:$0xff] }
0x1cfc   :  { %3895 = vmatprep.mubr.f32.mxu0 %v2098_v0  ;;  %v2093_v2 = vmul.f32 %v2091_v58, %v2087_v6  ;;  %v2307_v58 = vld [vmem:[%s5883_s6 + $0x38] sm:$0xff] }
0x1cfd   :  { %v4458_v59 = vpack.c.bf16 %v2307_v58, %v2306_v57 }
0x1cfe   :  { %v2099_v10 = vadd.f32 %v2097_v62, %v2093_v2  ;;  %v3234_v62 = vld [vmem:[%s5883_s6 + $0xb8] sm:$0xff]  ;;  %v3235_v2 = vld [vmem:[%s5883_s6 + $0xc0] sm:$0xff] }
0x1cff   :  { %v4434_v63 = vpack.c.bf16 %v3234_v62, %v3233_v60  ;;  %v3246_v60 = vld [vmem:[%s5883_s6 + $0x118] sm:$0xff] }
0x1d00   :  { %3896 = vmatmul.mubr.f32.vlgmr.msra.gmra.mrb[18].mxu0 %v2099_v10 }
0x1d01   :  { %3965 = vmatprep.mubr.msk.f32.mxu0 %vm4711_vm1, %v4710_v5  ;;  %4426 = vmatpush3.bf16.msra.mxu0 %v4425_v37 }
0x1d02   :  { %4427 = vmatprep.subr.bf16.mxu0 %v4718_v33 }
0x1d05   :  { %4429 = vmatpush3.bf16.msra.mxu0 %v4428_v41 }
0x1d06   :  { %4430 = vmatprep.subr.bf16.mxu0 %v4718_v33 }
0x1dd3   :  { %v3897_v11 = vpop.f32.mrb[18].mxu0 }
0x1dd4   :  { %v2176_v12 = vadd.f32 %v3897_v11, %v2103_v4  ;;  %v2170_v13 = vpop.f32.mrb[19].mxu0  ;;  %v3237_v11 = vld [vmem:[%s5883_s6 + $0xd0] sm:$0xff] }
0x1dd5   :  { %v2171_v15 = vadd.f32 %v2170_v13, %v2103_v4  ;;  %v4464_v4 = vpack.c.bf16 %v2311_v1, %v2310_v28 }
0x1dd6   :  { %v2180_v19 = vmax.f32 %v2176_v12, 0.0  ;;  %v3238_v12 = vld [vmem:[%s5883_s6 + $0xd8] sm:$0xff] }
0x1dd7   :  { %v2179_v16 = vmax.f32 %v2171_v15, 0.0  ;;  %v4440_v13 = vpack.c.bf16 %v3238_v12, %v3237_v11  ;;  %v2312_v15 = vld [vmem:[%s5883_s6 + $0x60] sm:$0xff] }
0x1dd8   :  { %v3263_v12 = vld [vmem:[%s5883_s6 + $0x1a0] sm:$0xff] }
0x1dd9   :  { %3930 = vmatprep.mubr.f32.mxu1 %v2179_v16  ;;  %v2313_v16 = vld [vmem:[%s5883_s6 + $0x68] sm:$0xff] }
0x1dda   :  { %3931 = vmatmul.mubr.f32.vlgmr.msra.gmra.mrb[26].mxu1 %v2180_v19  ;;  %v4467_v19 = vpack.c.bf16 %v2313_v16, %v2312_v15  ;;  %v3247_v15 = vld [vmem:[%s5883_s6 + $0x120] sm:$0xff]  ;;  %v3248_v16 = vld [vmem:[%s5883_s6 + $0x128] sm:$0xff] }
0x1ddb   :  { %4000 = vmatprep.mubr.msk.f32.mxu1 %vm4711_vm1, %v4710_v5  ;;  %4450 = vmatpush3.bf16.msra.mxu1 %v4449_v34 }
0x1ddc   :  { %4451 = vmatprep.subr.bf16.mxu1 %v4718_v33 }
0x1ddf   :  { %4453 = vmatpush3.bf16.msra.mxu1 %v4452_v40 }
0x1de0   :  { %4454 = vmatprep.subr.bf16.mxu1 %v4718_v33 }
0x1de3   :  { %4456 = vmatpush3.bf16.msra.mxu1 %v4455_v56 }
0x1de4   :  { %4457 = vmatprep.subr.bf16.mxu1 %v4718_v33 }
0x1de7   :  { %4459 = vmatpush3.bf16.msra.mxu1 %v4458_v59  ;;  %v3245_v59 = vld [vmem:[%s5883_s6 + $0x110] sm:$0xff] }
0x1de8   :  { %4460 = vmatprep.subr.bf16.mxu1 %v4718_v33  ;;  %v4476_v11 = vpack.c.bf16 %v3246_v60, %v3245_v59 }
0x1ead   :  { %v3932_v23 = vpop.f32.mrb[26].mxu1 }
0x1eae   :  { %v2257_v44 = vadd.f32 %v3932_v23, %v2184_v20  ;;  %v2251_v24 = vpop.f32.mrb[27].mxu1  ;;  %v3240_v23 = vld [vmem:[%s5883_s6 + $0xe8] sm:$0xff] }
0x1eaf   :  { %v2252_v25 = vadd.f32 %v2251_v24, %v2184_v20  ;;  %v3239_v20 = vld [vmem:[%s5883_s6 + $0xe0] sm:$0xff]  ;;  %v2314_v24 = vld [vmem:[%s5883_s6 + $0x70] sm:$0xff] }
0x1eb0   :  { %v2261_v7 = vmax.f32 %v2257_v44, 0.0  ;;  %v4443_v44 = vpack.c.bf16 %v3240_v23, %v3239_v20 }
0x1eb1   :  { %v2260_v26 = vmax.f32 %v2252_v25, 0.0  ;;  %v2315_v25 = vld [vmem:[%s5883_s6 + $0x78] sm:$0xff] }
0x1eb2   :  { %v2263_v27 = vadd.f32 %v2261_v7, %v2099_v10  ;;  %v3236_v10 = vld [vmem:[%s5883_s6 + $0xc8] sm:$0xff]  ;;  %v4470_v7 = vpack.c.bf16 %v2315_v25, %v2314_v24  ;;  %v3265_v24 = vld [vmem:[%s5883_s6 + $0x1b0] sm:$0xff]  ;;  %v3266_v25 = vld [vmem:[%s5883_s6 + $0x1b8] sm:$0xff] }
0x1eb3   :  { %v2262_v30 = vadd.f32 %v2260_v26, %v2098_v0  ;;  %v2309_v0 = vld [vmem:[%s5883_s6 + $0x48] sm:$0xff]  ;;  %v4437_v55 = vpack.c.bf16 %v3236_v10, %v3235_v2  ;;  %v3241_v26 = vld [vmem:[%s5883_s6 + $0xf0] sm:$0xff] }
0x1eb4   :  { %2266 = vadd.xlane.f32.xlu0 %v2263_v27  ;;  %v4461_v6 = vpack.c.bf16 %v2309_v0, %v2308_v3 }
0x1eb5   :  { %2264 = vadd.xlane.f32.xlu1 %v2262_v30 }
0x1eb6   :  { %4462 = vmatpush3.bf16.msra.mxu1 %v4461_v6 }
0x1eb7   :  { %4463 = vmatprep.subr.bf16.mxu1 %v4718_v33 }
0x1eba   :  { %4465 = vmatpush3.bf16.msra.mxu1 %v4464_v4 }
0x1ebb   :  { %4466 = vmatprep.subr.bf16.mxu1 %v4718_v33 }
0x1ebe   :  { %4468 = vmatpush3.bf16.msra.mxu1 %v4467_v19 }
0x1ebf   :  { %4469 = vmatprep.subr.bf16.mxu1 %v4718_v33 }
0x1ec2   :  { %4471 = vmatpush3.bf16.msra.mxu1 %v4470_v7  ;;  %v3249_v7 = vld [vmem:[%s5883_s6 + $0x130] sm:$0xff] }
0x1ec3   :  { %4496 = vmatprep.subr.bf16.mxu1 %v4718_v33 }
0x1f41   :  { %v2267_v45 = vpop.xlane.xlu0 %2266 }
0x1f42   :  { %v2269_v22 = vmul.f32 0.125, %v2267_v45  ;;  %v2265_v47 = vpop.xlane.xlu1 %2264  ;;  %v3259_v45 = vld [vmem:[%s5883_s6 + $0x180] sm:$0xff] }
0x1f43   :  { %v2268_v48 = vmul.f32 0.125, %v2265_v47 }
0x1f44   :  { %v2271_v49 = vsub.f32 %v2263_v27, %v2269_v22  ;;  %v3242_v27 = vld [vmem:[%s5883_s6 + $0xf8] sm:$0xff]  ;;  %v3260_v22 = vld [vmem:[%s5883_s6 + $0x188] sm:$0xff] }
0x1f45   :  { %v2270_v50 = vsub.f32 %v2262_v30, %v2268_v48  ;;  %v4446_v30 = vpack.c.bf16 %v3242_v27, %v3241_v26  ;;  %v3250_v26 = vld [vmem:[%s5883_s6 + $0x138] sm:$0xff]  ;;  %v4506_v27 = vpack.c.bf16 %v3266_v25, %v3265_v24 }
0x1f46   :  { %v5356_v51 = vmul.f32 %v4939_v61, %v2271_v49 }
0x1f47   :  { %v5359_v52 = vmul.f32 %v4939_v61, %v2270_v50  ;;  %v3231_v61 = vld [vmem:[%s5883_s6 + $0xa0] sm:$0xff] }
0x1f48   :  { %v2275_v53 = vmul.f32 %v5356_v51, %v5356_v51  ;;  %v4431_v17 = vpack.c.bf16 %v3232_v21, %v3231_v61 }
0x1f49   :  { %v2274_v54 = vmul.f32 %v5359_v52, %v5359_v52 }
0x1f4a   :  { %2278 = vadd.xlane.f32.xlu0 %v2275_v53  ;;  %4432 = vmatpush3.bf16.msra.mxu0 %v4431_v17  ;;  %v4500_v53 = vpack.c.bf16 %v3262_v46, %v3261_v9  ;;  %v3273_v46 = vld [vmem:[%s5883_s6 + $0x1f0] sm:$0xff] }
0x1f4b   :  { %2276 = vadd.xlane.f32.xlu1 %v2274_v54  ;;  %4433 = vmatprep.subr.bf16.mxu0 %v4718_v33 }
0x1f4e   :  { %4435 = vmatpush3.bf16.msra.mxu0 %v4434_v63 }
0x1f4f   :  { %4436 = vmatprep.subr.bf16.mxu0 %v4718_v33 }
0x1f52   :  { %4438 = vmatpush3.bf16.msra.mxu0 %v4437_v55 }
0x1f53   :  { %4439 = vmatprep.subr.bf16.mxu0 %v4718_v33 }
0x1f56   :  { %4441 = vmatpush3.bf16.msra.mxu0 %v4440_v13  ;;  %v3264_v13 = vld [vmem:[%s5883_s6 + $0x1a8] sm:$0xff] }
0x1f57   :  { %4442 = vmatprep.subr.bf16.mxu0 %v4718_v33  ;;  %v4503_v23 = vpack.c.bf16 %v3264_v13, %v3263_v12 }
0x1f5a   :  { %4444 = vmatpush3.bf16.msra.mxu0 %v4443_v44  ;;  %v4479_v44 = vpack.c.bf16 %v3248_v16, %v3247_v15  ;;  %v3299_v15 = vld [vmem:[%s5883_s6 + $0x2c0] sm:$0xff]  ;;  %v3300_v16 = vld [vmem:[%s5883_s6 + $0x2c8] sm:$0xff] }
0x1f5b   :  { %4445 = vmatprep.subr.bf16.mxu0 %v4718_v33  ;;  %v4557_v24 = vpack.c.bf16 %v3300_v16, %v3299_v15  ;;  %v3335_v15 = vld [vmem:[%s5883_s6 + $0x3e0] sm:$0xff]  ;;  %v3336_v16 = vld [vmem:[%s5883_s6 + $0x3e8] sm:$0xff] }
0x1f5e   :  { %4447 = vmatpush3.bf16.msra.mxu0 %v4446_v30  ;;  %v4482_v30 = vpack.c.bf16 %v3250_v26, %v3249_v7  ;;  %v3301_v7 = vld [vmem:[%s5883_s6 + $0x2d0] sm:$0xff]  ;;  %v3302_v26 = vld [vmem:[%s5883_s6 + $0x2d8] sm:$0xff] }
0x1f5f   :  { %4472 = vmatprep.subr.bf16.mxu0 %v4718_v33 }
0x1fd7   :  { %v2279_v31 = vpop.xlane.xlu0 %2278 }
0x1fd8   :  { %v2281_v32 = vmul.f32 0.125, %v2279_v31  ;;  %v2277_v14 = vpop.xlane.xlu1 %2276  ;;  %v3267_v31 = vld [vmem:[%s5883_s6 + $0x1c0] sm:$0xff] }
0x1fd9   :  { %v2280_v34 = vmul.f32 0.125, %v2277_v14  ;;  %v3251_v14 = vld [vmem:[%s5883_s6 + $0x140] sm:$0xff] }
0x1fda   :  { %v2283_v35 = vadd.f32 1e-06, %v2281_v32  ;;  %v3268_v32 = vld [vmem:[%s5883_s6 + $0x1c8] sm:$0xff] }
0x1fdb   :  { %v2282_v36 = vadd.f32 1e-06, %v2280_v34  ;;  %v3252_v34 = vld [vmem:[%s5883_s6 + $0x148] sm:$0xff] }
0x1fdc   :  { %4682 = vrsqrt.f32 %v2283_v35  ;;  %v4509_v35 = vpack.c.bf16 %v3268_v32, %v3267_v31  ;;  %v4560_v31 = vpack.c.bf16 %v3302_v26, %v3301_v7  ;;  %v3337_v7 = vld [vmem:[%s5883_s6 + $0x3f0] sm:$0xff]  ;;  %v3338_v26 = vld [vmem:[%s5883_s6 + $0x3f8] sm:$0xff] }
0x1fdd   :  { %4684 = vrsqrt.f32 %v2282_v36  ;;  %v4485_v36 = vpack.c.bf16 %v3252_v34, %v3251_v14  ;;  %v3303_v14 = vld [vmem:[%s5883_s6 + $0x2e0] sm:$0xff]  ;;  %v3304_v34 = vld [vmem:[%s5883_s6 + $0x2e8] sm:$0xff] }
0x1fe6   :  { %v4683_v37 = vpop.eup %4682 }
0x1fe7   :  { %v4685_v38 = vpop.eup %4684  ;;  %v2287_v40 = vmul.f32 %v4683_v37, %v5356_v51  ;;  %v4497_v51 = vpack.c.bf16 %v3260_v22, %v3259_v45  ;;  %v3270_v37 = vld [vmem:[%s5883_s6 + $0x1d8] sm:$0xff]  ;;  %v3271_v45 = vld [vmem:[%s5883_s6 + $0x1e0] sm:$0xff]  ;;  %v3272_v22 = vld [vmem:[%s5883_s6 + $0x1e8] sm:$0xff] }
0x1fe8   :  { %v2286_v41 = vmul.f32 %v4685_v38, %v5359_v52  ;;  %v4473_v52 = vpack.c.bf16 %v3244_v42, %v3243_v8  ;;  %v3253_v38 = vld [vmem:[%s5883_s6 + $0x150] sm:$0xff]  ;;  %v3255_v8 = vld [vmem:[%s5883_s6 + $0x160] sm:$0xff]  ;;  %v4515_v42 = vpack.c.bf16 %v3272_v22, %v3271_v45 }
0x1fe9   :  { %v2293_v47 = vmul.f32 %v2291_v29, %v2287_v40 }
0x1fea   :  { %v2292_v48 = vmul.f32 %v2291_v29, %v2286_v41  ;;  %v3269_v29 = vld [vmem:[%s5883_s6 + $0x1d0] sm:$0xff] }
0x1feb   :  { %v2299_v49 = vadd.f32 %v2297_v39, %v2293_v47  ;;  %v4512_v40 = vpack.c.bf16 %v3270_v37, %v3269_v29  ;;  %v3256_v47 = vld [vmem:[%s5883_s6 + $0x168] sm:$0xff]  ;;  %v4563_v29 = vpack.c.bf16 %v3304_v34, %v3303_v14  ;;  %v3043_v14 = vld [vmem:[%s5885_s8] sm:$0xff] }
0x1fec   :  { %v2298_v50 = vadd.f32 %v2297_v39, %v2292_v48  ;;  %v3254_v39 = vld [vmem:[%s5883_s6 + $0x158] sm:$0xff]  ;;  %v4491_v9 = vpack.c.bf16 %v3256_v47, %v3255_v8  ;;  %v3323_v8 = vld [vmem:[%s5883_s6 + $0x380] sm:$0xff]  ;;  %v3324_v47 = vld [vmem:[%s5883_s6 + $0x388] sm:$0xff] }
0x1fed   :  { %v2409_v54 = vrot.slane %v2299_v49, 7  ;;  %v2592_v18 = vrot.slane %v2299_v49, 2  ;;  %v2500_v43 = vrot.slane %v2299_v49, 1  ;;  %v2776_v56 = vrot.slane %v2299_v49, 4  ;;  %v3274_v48 = vld [vmem:[%s5883_s6 + $0x1f8] sm:$0xff]  ;;  %v3044_v34 = vld [vmem:[%s5885_s8 + $0x8] sm:$0xff] }
0x1fee   :  { %v2335_v61 = vrot.slane %v2298_v50, 1  ;;  %v2591_v21 = vrot.slane %v2298_v50, 3  ;;  %v2499_v17 = vrot.slane %v2298_v50, 2  ;;  %v2775_v57 = vrot.slane %v2298_v50, 5 }
0x1fef   :  { %v2410_v58 = vsel %vm2336_vm4, %v2409_v54, %v2298_v50  ;;  %v2683_v62 = vrot.slane %v2298_v50, 4  ;;  %v2684_v63 = vrot.slane %v2299_v49, 3  ;;  %v2959_v3 = vrot.slane %v2298_v50, 7  ;;  %v3292_v54 = vld [vmem:[%s5883_s6 + $0x288] sm:$0xff] }
0x1ff0   :  { %4001 = vmatmul.mubr.f32.vlgmr.msra.gmra.mrb[28].mxu1 %v2410_v58  ;;  %v2337_v0 = vsel %vm2336_vm4, %v2299_v49, %v2335_v61  ;;  %v5484_v6 = vsel %vm2336_vm4, %v2592_v18, %v2591_v21  ;;  %v5487_v2 = vsel %vm2336_vm4, %v2500_v43, %v2499_v17  ;;  %v5490_v10 = vsel %vm2336_vm4, %v2776_v56, %v2775_v57  ;;  %v3275_v18 = vld [vmem:[%s5883_s6 + $0x200] sm:$0xff]  ;;  %v3276_v43 = vld [vmem:[%s5883_s6 + $0x208] sm:$0xff]  ;;  %v3293_v21 = vld [vmem:[%s5883_s6 + $0x290] sm:$0xff] }
0x1ff1   :  { %4498 = vmatpush3.bf16.msra.mxu1 %v4497_v51  ;;  %3966 = vmatmul.mubr.f32.vlgmr.msra.gmra.mrb[20].mxu0 %v2337_v0  ;;  %v5493_v55 = vsel %vm2336_vm4, %v2684_v63, %v2683_v62  ;;  %v2960_v28 = vrot.slane %v2299_v49, 6  ;;  %v2867_v1 = vrot.slane %v2298_v50, 6  ;;  %v2868_v4 = vrot.slane %v2299_v49, 5  ;;  %v3257_v49 = vld [vmem:[%s5883_s6 + $0x170] sm:$0xff]  ;;  %v3258_v50 = vld [vmem:[%s5883_s6 + $0x178] sm:$0xff]  ;;  %v3295_v62 = vld [vmem:[%s5883_s6 + $0x2a0] sm:$0xff] }
0x1ff2   :  { %4474 = vmatpush3.bf16.msra.mxu0 %v4473_v52  ;;  %4499 = vmatprep.subr.bf16.mxu1 %v4718_v33  ;;  %v4488_v41 = vpack.c.bf16 %v3254_v39, %v3253_v38  ;;  %v4518_v51 = vpack.c.bf16 %v3274_v48, %v3273_v46  ;;  %v4494_v52 = vpack.c.bf16 %v3258_v50, %v3257_v49  ;;  %v3294_v17 = vld [vmem:[%s5883_s6 + $0x298] sm:$0xff]  ;;  %v3277_v57 = vld [vmem:[%s5883_s6 + $0x210] sm:$0xff]  ;;  %v3296_v63 = vld [vmem:[%s5883_s6 + $0x2a8] sm:$0xff] }
0x1ff3   :  { %4475 = vmatprep.subr.bf16.mxu0 %v4718_v33  ;;  %4070 = vmatprep.mubr.msk.f32.mxu1 %vm4711_vm1, %v4710_v5  ;;  %v5512_v19 = vsel %vm2336_vm4, %v2960_v28, %v2959_v3  ;;  %v5515_v20 = vsel %vm2336_vm4, %v2868_v4, %v2867_v1  ;;  %v4521_v61 = vpack.c.bf16 %v3276_v43, %v3275_v18  ;;  %v3278_v58 = vld [vmem:[%s5883_s6 + $0x218] sm:$0xff]  ;;  %v3279_v3 = vld [vmem:[%s5883_s6 + $0x220] sm:$0xff]  ;;  %v3280_v0 = vld [vmem:[%s5883_s6 + $0x228] sm:$0xff] }
0x1ff4   :  { %4035 = vmatprep.mubr.msk.f32.mxu0 %vm4711_vm1, %v4710_v5  ;;  %v4548_v59 = vpack.c.bf16 %v3294_v17, %v3293_v21  ;;  %v4524_v60 = vpack.c.bf16 %v3278_v58, %v3277_v57  ;;  %v3297_v28 = vld [vmem:[%s5883_s6 + $0x2b0] sm:$0xff]  ;;  %v3298_v1 = vld [vmem:[%s5883_s6 + $0x2b8] sm:$0xff]  ;;  %v4593_v46 = vpack.c.bf16 %v3324_v47, %v3323_v8  ;;  %v3327_v18 = vld [vmem:[%s5883_s6 + $0x3a0] sm:$0xff] }
0x1ff5   :  { %4501 = vmatpush3.bf16.msra.mxu1 %v4500_v53  ;;  %v3291_v53 = vld [vmem:[%s5883_s6 + $0x280] sm:$0xff]  ;;  %v3281_v4 = vld [vmem:[%s5883_s6 + $0x230] sm:$0xff]  ;;  %v4554_v12 = vpack.c.bf16 %v3298_v1, %v3297_v28  ;;  %v3306_v39 = vld [vmem:[%s5883_s6 + $0x2f8] sm:$0xff] }
0x1ff6   :  { %4477 = vmatpush3.bf16.msra.mxu0 %v4476_v11  ;;  %4502 = vmatprep.subr.bf16.mxu1 %v4718_v33  ;;  %v4545_v56 = vpack.c.bf16 %v3292_v54, %v3291_v53  ;;  %v3282_v11 = vld [vmem:[%s5883_s6 + $0x238] sm:$0xff]  ;;  %v3305_v38 = vld [vmem:[%s5883_s6 + $0x2f0] sm:$0xff]  ;;  %v3328_v43 = vld [vmem:[%s5883_s6 + $0x3a8] sm:$0xff] }
0x1ff7   :  { %4478 = vmatprep.subr.bf16.mxu0 %v4718_v33  ;;  %v4530_v13 = vpack.c.bf16 %v3282_v11, %v3281_v4  ;;  %v4566_v45 = vpack.c.bf16 %v3306_v39, %v3305_v38  ;;  %v3325_v49 = vld [vmem:[%s5883_s6 + $0x390] sm:$0xff]  ;;  %v3326_v50 = vld [vmem:[%s5883_s6 + $0x398] sm:$0xff] }
0x1ff8   :  { %v4596_v53 = vpack.c.bf16 %v3326_v50, %v3325_v49  ;;  %v3329_v21 = vld [vmem:[%s5883_s6 + $0x3b0] sm:$0xff]  ;;  %v3330_v17 = vld [vmem:[%s5883_s6 + $0x3b8] sm:$0xff] }
0x1ff9   :  { %4504 = vmatpush3.bf16.msra.mxu1 %v4503_v23  ;;  %v3283_v23 = vld [vmem:[%s5883_s6 + $0x240] sm:$0xff]  ;;  %v3313_v57 = vld [vmem:[%s5883_s6 + $0x330] sm:$0xff]  ;;  %v3314_v58 = vld [vmem:[%s5883_s6 + $0x338] sm:$0xff] }
0x1ffa   :  { %4480 = vmatpush3.bf16.msra.mxu0 %v4479_v44  ;;  %4505 = vmatprep.subr.bf16.mxu1 %v4718_v33  ;;  %v3284_v44 = vld [vmem:[%s5883_s6 + $0x248] sm:$0xff]  ;;  %v3333_v28 = vld [vmem:[%s5883_s6 + $0x3d0] sm:$0xff]  ;;  %v3334_v1 = vld [vmem:[%s5883_s6 + $0x3d8] sm:$0xff] }
0x1ffb   :  { %4481 = vmatprep.subr.bf16.mxu0 %v4718_v33  ;;  %v4533_v25 = vpack.c.bf16 %v3284_v44, %v3283_v23  ;;  %v3317_v4 = vld [vmem:[%s5883_s6 + $0x350] sm:$0xff]  ;;  %v3318_v11 = vld [vmem:[%s5883_s6 + $0x358] sm:$0xff]  ;;  %v3319_v23 = vld [vmem:[%s5883_s6 + $0x360] sm:$0xff] }
0x1ffc   :  { %v3320_v44 = vld [vmem:[%s5883_s6 + $0x368] sm:$0xff]  ;;  %v3049_v38 = vld [vmem:[%s5885_s8 + $0x30] sm:$0xff]  ;;  %v3050_v39 = vld [vmem:[%s5885_s8 + $0x38] sm:$0xff] }
0x1ffd   :  { %4507 = vmatpush3.bf16.msra.mxu1 %v4506_v27  ;;  %v3285_v27 = vld [vmem:[%s5883_s6 + $0x250] sm:$0xff] }
0x1ffe   :  { %4483 = vmatpush3.bf16.msra.mxu0 %v4482_v30  ;;  %4508 = vmatprep.subr.bf16.mxu1 %v4718_v33  ;;  %v3286_v30 = vld [vmem:[%s5883_s6 + $0x258] sm:$0xff] }
0x1fff   :  { %4484 = vmatprep.subr.bf16.mxu0 %v4718_v33  ;;  %v4536_v32 = vpack.c.bf16 %v3286_v30, %v3285_v27  ;;  %v3321_v27 = vld [vmem:[%s5883_s6 + $0x370] sm:$0xff]  ;;  %v3322_v30 = vld [vmem:[%s5883_s6 + $0x378] sm:$0xff] }
0x2001   :  { %4510 = vmatpush3.bf16.msra.mxu1 %v4509_v35  ;;  %v3287_v35 = vld [vmem:[%s5883_s6 + $0x260] sm:$0xff] }
0x2002   :  { %4486 = vmatpush3.bf16.msra.mxu0 %v4485_v36  ;;  %4511 = vmatprep.subr.bf16.mxu1 %v4718_v33  ;;  %v3288_v36 = vld [vmem:[%s5883_s6 + $0x268] sm:$0xff] }
0x2003   :  { %4487 = vmatprep.subr.bf16.mxu0 %v4718_v33  ;;  %v4539_v37 = vpack.c.bf16 %v3288_v36, %v3287_v35  ;;  %v3045_v35 = vld [vmem:[%s5885_s8 + $0x10] sm:$0xff]  ;;  %v4617_v36 = vpack.c.bf16 %v3044_v34, %v3043_v14 }
0x2005   :  { %4513 = vmatpush3.bf16.msra.mxu1 %v4512_v40  ;;  %v3289_v40 = vld [vmem:[%s5883_s6 + $0x270] sm:$0xff] }
0x2006   :  { %4489 = vmatpush3.bf16.msra.mxu0 %v4488_v41  ;;  %4514 = vmatprep.subr.bf16.mxu1 %v4718_v33  ;;  %v3290_v41 = vld [vmem:[%s5883_s6 + $0x278] sm:$0xff] }
0x2007   :  { %4490 = vmatprep.subr.bf16.mxu0 %v4718_v33  ;;  %v4542_v22 = vpack.c.bf16 %v3290_v41, %v3289_v40  ;;  %v4626_v40 = vpack.c.bf16 %v3050_v39, %v3049_v38 }
0x2009   :  { %4516 = vmatpush3.bf16.msra.mxu1 %v4515_v42  ;;  %v3307_v42 = vld [vmem:[%s5883_s6 + $0x300] sm:$0xff] }
0x200a   :  { %4492 = vmatpush3.bf16.msra.mxu0 %v4491_v9  ;;  %4517 = vmatprep.subr.bf16.mxu1 %v4718_v33  ;;  %v3308_v9 = vld [vmem:[%s5883_s6 + $0x308] sm:$0xff] }
0x200b   :  { %4493 = vmatprep.subr.bf16.mxu0 %v4718_v33  ;;  %v4569_v48 = vpack.c.bf16 %v3308_v9, %v3307_v42 }
0x200d   :  { %4519 = vmatpush3.bf16.msra.mxu1 %v4518_v51  ;;  %v3309_v51 = vld [vmem:[%s5883_s6 + $0x310] sm:$0xff] }
0x200e   :  { %4495 = vmatpush3.bf16.msra.mxu0 %v4494_v52  ;;  %4544 = vmatprep.subr.bf16.mxu1 %v4718_v33  ;;  %v3310_v52 = vld [vmem:[%s5883_s6 + $0x318] sm:$0xff] }
0x200f   :  { %4520 = vmatprep.subr.bf16.mxu0 %v4718_v33  ;;  %v4572_v54 = vpack.c.bf16 %v3310_v52, %v3309_v51 }
0x2010   :  { %4071 = vmatmul.mubr.f32.vlgmr.msra.gmra.mrb[30].mxu1 %v5484_v6  ;;  %v4551_v6 = vpack.c.bf16 %v3296_v63, %v3295_v62  ;;  %v3331_v62 = vld [vmem:[%s5883_s6 + $0x3c0] sm:$0xff]  ;;  %v3332_v63 = vld [vmem:[%s5883_s6 + $0x3c8] sm:$0xff] }
0x2011   :  { %4036 = vmatmul.mubr.f32.vlgmr.msra.gmra.mrb[22].mxu0 %v5487_v2  ;;  %4546 = vmatpush3.bf16.msra.mxu1 %v4545_v56  ;;  %v4527_v2 = vpack.c.bf16 %v3280_v0, %v3279_v3  ;;  %v4599_v56 = vpack.c.bf16 %v3328_v43, %v3327_v18  ;;  %v3315_v3 = vld [vmem:[%s5883_s6 + $0x340] sm:$0xff]  ;;  %v3316_v0 = vld [vmem:[%s5883_s6 + $0x348] sm:$0xff] }
0x2012   :  { %4522 = vmatpush3.bf16.msra.mxu0 %v4521_v61  ;;  %4547 = vmatprep.subr.bf16.mxu1 %v4718_v33 }
0x2013   :  { %4523 = vmatprep.subr.bf16.mxu0 %v4718_v33  ;;  %4140 = vmatprep.mubr.msk.f32.mxu1 %vm4711_vm1, %v4710_v5 }
0x2014   :  { %4105 = vmatprep.mubr.msk.f32.mxu0 %vm4711_vm1, %v4710_v5 }
0x2015   :  { %4549 = vmatpush3.bf16.msra.mxu1 %v4548_v59  ;;  %v4602_v59 = vpack.c.bf16 %v3330_v17, %v3329_v21  ;;  %v3339_v21 = vld [vmem:[%s5884_s7] ss:$0 sm:$0xff] }
0x2016   :  { %4525 = vmatpush3.bf16.msra.mxu0 %v4524_v60  ;;  %4550 = vmatprep.subr.bf16.mxu1 %v4718_v33  ;;  %v4578_v60 = vpack.c.bf16 %v3314_v58, %v3313_v57 }
0x2017   :  { %4526 = vmatprep.subr.bf16.mxu0 %v4718_v33 }
0x2019   :  { %4552 = vmatpush3.bf16.msra.mxu1 %v4551_v6  ;;  %v4605_v6 = vpack.c.bf16 %v3332_v63, %v3331_v62 }
0x201a   :  { %4528 = vmatpush3.bf16.msra.mxu0 %v4527_v2  ;;  %4553 = vmatprep.subr.bf16.mxu1 %v4718_v33  ;;  %v4581_v2 = vpack.c.bf16 %v3316_v0, %v3315_v3 }
0x201b   :  { %4529 = vmatprep.subr.bf16.mxu0 %v4718_v33 }
0x201d   :  { %4555 = vmatpush3.bf16.msra.mxu1 %v4554_v12  ;;  %v4608_v12 = vpack.c.bf16 %v3334_v1, %v3333_v28 }
0x201e   :  { %4531 = vmatpush3.bf16.msra.mxu0 %v4530_v13  ;;  %4556 = vmatprep.subr.bf16.mxu1 %v4718_v33  ;;  %v4584_v13 = vpack.c.bf16 %v3318_v11, %v3317_v4 }
0x201f   :  { %4532 = vmatprep.subr.bf16.mxu0 %v4718_v33 }
0x2021   :  { %4558 = vmatpush3.bf16.msra.mxu1 %v4557_v24  ;;  %v4611_v24 = vpack.c.bf16 %v3336_v16, %v3335_v15 }
0x2022   :  { %4534 = vmatpush3.bf16.msra.mxu0 %v4533_v25  ;;  %4559 = vmatprep.subr.bf16.mxu1 %v4718_v33  ;;  %v4587_v25 = vpack.c.bf16 %v3320_v44, %v3319_v23 }
0x2023   :  { %4535 = vmatprep.subr.bf16.mxu0 %v4718_v33 }
0x2025   :  { %4561 = vmatpush3.bf16.msra.mxu1 %v4560_v31  ;;  %v4614_v31 = vpack.c.bf16 %v3338_v26, %v3337_v7 }
0x2026   :  { %4537 = vmatpush3.bf16.msra.mxu0 %v4536_v32  ;;  %4562 = vmatprep.subr.bf16.mxu1 %v4718_v33  ;;  %v4590_v32 = vpack.c.bf16 %v3322_v30, %v3321_v27 }
0x2027   :  { %4538 = vmatprep.subr.bf16.mxu0 %v4718_v33 }
0x2029   :  { %4564 = vmatpush3.bf16.msra.mxu1 %v4563_v29  ;;  %v3048_v29 = vld [vmem:[%s5885_s8 + $0x28] sm:$0xff] }
0x202a   :  { %4540 = vmatpush3.bf16.msra.mxu0 %v4539_v37  ;;  %4565 = vmatprep.subr.bf16.mxu1 %v4718_v33 }
0x202b   :  { %4541 = vmatprep.subr.bf16.mxu0 %v4718_v33 }
0x202d   :  { %4567 = vmatpush3.bf16.msra.mxu1 %v4566_v45 }
0x202e   :  { %4543 = vmatpush3.bf16.msra.mxu0 %v4542_v22  ;;  %4592 = vmatprep.subr.bf16.mxu1 %v4718_v33 }
0x202f   :  { %4568 = vmatprep.subr.bf16.mxu0 %v4718_v33 }
0x2030   :  { %4141 = vmatmul.mubr.f32.vlgmr.msra.gmra.mrb[32].mxu1 %v5490_v10  ;;  %v3311_v10 = vld [vmem:[%s5883_s6 + $0x320] sm:$0xff] }
0x2031   :  { %4106 = vmatmul.mubr.f32.vlgmr.msra.gmra.mrb[24].mxu0 %v5493_v55  ;;  %4594 = vmatpush3.bf16.msra.mxu1 %v4593_v46  ;;  %v3312_v55 = vld [vmem:[%s5883_s6 + $0x328] sm:$0xff] }
0x2032   :  { %4570 = vmatpush3.bf16.msra.mxu0 %v4569_v48  ;;  %4595 = vmatprep.subr.bf16.mxu1 %v4718_v33  ;;  %v4575_v61 = vpack.c.bf16 %v3312_v55, %v3311_v10 }
0x2033   :  { %4571 = vmatprep.subr.bf16.mxu0 %v4718_v33  ;;  %4210 = vmatprep.mubr.msk.f32.mxu1 %vm4711_vm1, %v4710_v5 }
0x2034   :  { %4175 = vmatprep.mubr.msk.f32.mxu0 %vm4711_vm1, %v4710_v5 }
0x2035   :  { %4597 = vmatpush3.bf16.msra.mxu1 %v4596_v53 }
0x2036   :  { %4573 = vmatpush3.bf16.msra.mxu0 %v4572_v54  ;;  %4598 = vmatprep.subr.bf16.mxu1 %v4718_v33 }
0x2037   :  { %4574 = vmatprep.subr.bf16.mxu0 %v4718_v33 }
0x2039   :  { %4600 = vmatpush3.bf16.msra.mxu1 %v4599_v56 }
0x203a   :  { %4576 = vmatpush3.bf16.msra.mxu0 %v4575_v61  ;;  %4601 = vmatprep.subr.bf16.mxu1 %v4718_v33 }
0x203b   :  { %4577 = vmatprep.subr.bf16.mxu0 %v4718_v33 }
0x203d   :  { %4603 = vmatpush3.bf16.msra.mxu1 %v4602_v59  ;;  %v3340_v59 = vld [vmem:[%s5886_s9] ss:$0 sm:$0xff] }
0x203e   :  { %4579 = vmatpush3.bf16.msra.mxu0 %v4578_v60  ;;  %4604 = vmatprep.subr.bf16.mxu1 %v4718_v33 }
0x203f   :  { %4580 = vmatprep.subr.bf16.mxu0 %v4718_v33 }
0x2041   :  { %4606 = vmatpush3.bf16.msra.mxu1 %v4605_v6 }
0x2042   :  { %4582 = vmatpush3.bf16.msra.mxu0 %v4581_v2  ;;  %4607 = vmatprep.subr.bf16.mxu1 %v4718_v33 }
0x2043   :  { %4583 = vmatprep.subr.bf16.mxu0 %v4718_v33 }
0x2045   :  { %4609 = vmatpush3.bf16.msra.mxu1 %v4608_v12 }
0x2046   :  { %4585 = vmatpush3.bf16.msra.mxu0 %v4584_v13  ;;  %4610 = vmatprep.subr.bf16.mxu1 %v4718_v33 }
0x2047   :  { %4586 = vmatprep.subr.bf16.mxu0 %v4718_v33 }
0x2049   :  { %4612 = vmatpush3.bf16.msra.mxu1 %v4611_v24 }
0x204a   :  { %4588 = vmatpush3.bf16.msra.mxu0 %v4587_v25  ;;  %4613 = vmatprep.subr.bf16.mxu1 %v4718_v33 }
0x204b   :  { %4589 = vmatprep.subr.bf16.mxu0 %v4718_v33 }
0x204d   :  { %4615 = vmatpush3.bf16.msra.mxu1 %v4614_v31 }
0x204e   :  { %4591 = vmatpush3.bf16.msra.mxu0 %v4590_v32 }
0x204f   :  { %4616 = vmatprep.subr.bf16.mxu0 %v4718_v33 }
0x2050   :  { %4211 = vmatmul.mubr.f32.vlgmr.msra.gmra.mrb[34].mxu1 %v5512_v19  ;;  %v3046_v19 = vld [vmem:[%s5885_s8 + $0x18] sm:$0xff] }
0x2051   :  { %4176 = vmatmul.mubr.f32.vlgmr.msra.gmra.mrb[26].mxu0 %v5515_v20  ;;  %v4620_v20 = vpack.c.bf16 %v3046_v19, %v3045_v35 }
0x2052   :  { %4229 = vmatprep.mubr.msk.f32.mxu0 %vm4711_vm1, %v4710_v5  ;;  %4618 = vmatpush3.bf16.msra.mxu0 %v4617_v36  ;;  %v3047_v5 = vld [vmem:[%s5885_s8 + $0x20] sm:$0xff] }
0x2053   :  { %4619 = vmatprep.subr.bf16.mxu0 %v4718_v33  ;;  %v4623_v37 = vpack.c.bf16 %v3048_v29, %v3047_v5 }
0x2056   :  { %4621 = vmatpush3.bf16.msra.mxu0 %v4620_v20 }
0x2057   :  { %4622 = vmatprep.subr.bf16.mxu0 %v4718_v33 }
0x205a   :  { %4624 = vmatpush3.bf16.msra.mxu0 %v4623_v37 }
0x205b   :  { %4625 = vmatprep.subr.bf16.mxu0 %v4718_v33 }
0x205e   :  { %4627 = vmatpush3.bf16.msra.mxu0 %v4626_v40 }
0x20c3   :  { %v2478_v41 = vpop.f32.mrb[28].mxu1 }
0x20c4   :  { %v2405_v45 = vpop.f32.mrb[20].mxu0  ;;  %v4002_v22 = vpop.f32.mrb[29].mxu1 }
0x20c5   :  { %v2479_v8 = vadd.f32 %v2478_v41, %v2405_v45  ;;  %v3967_v47 = vpop.f32.mrb[21].mxu0 }
0x20e3   :  { %v2661_v42 = vpop.f32.mrb[30].mxu1 }
0x20e4   :  { %v2569_v9 = vpop.f32.mrb[22].mxu0  ;;  %v4072_v46 = vpop.f32.mrb[31].mxu1 }
0x20e5   :  { %v2573_v48 = vadd.f32 %v2569_v9, %v2479_v8  ;;  %v4037_v33 = vpop.f32.mrb[23].mxu0 }
0x20e7   :  { %v2665_v49 = vadd.f32 %v2661_v42, %v2573_v48 }
0x2103   :  { %v2845_v50 = vpop.f32.mrb[32].mxu1 }
0x2104   :  { %v2753_v51 = vpop.f32.mrb[24].mxu0  ;;  %v4142_v52 = vpop.f32.mrb[33].mxu1 }
0x2105   :  { %v2757_v53 = vadd.f32 %v2753_v51, %v2665_v49  ;;  %v4107_v54 = vpop.f32.mrb[25].mxu0 }
0x2107   :  { %v2849_v18 = vadd.f32 %v2845_v50, %v2757_v53 }
0x2123   :  { %v3029_v43 = vpop.f32.mrb[34].mxu1 }
0x2124   :  { %v2937_v10 = vpop.f32.mrb[26].mxu0  ;;  %v4212_v55 = vpop.f32.mrb[35].mxu1 }
0x2125   :  { %v2941_v56 = vadd.f32 %v2937_v10, %v2849_v18  ;;  %v4177_v61 = vpop.f32.mrb[27].mxu0 }
0x2127   :  { %v3033_v17 = vadd.f32 %v3029_v43, %v2941_v56 }
0x2129   :  { %v3041_v57 = vadd.f32 %v3339_v21, %v3033_v17 }
0x212b   :  { %v3042_v58 = vmax.f32 %v3041_v57, 0.0 }
0x212d   :  { %4230 = vmatmul.mubr.msk.f32.vlgmr.msra.gmra.mrb[28].mxu0 %vm3058_vm5, %v3042_v58 }
0x2200   :  { %v3128_v60 = vpop.f32.mrb[28].mxu0 }
0x2201   :  { %v3129_v62 = vadd.f32 %v3340_v59, %v3128_v60  ;;  %v4231_v63 = vpop.f32.mrb[29].mxu0 }
0x2203   :  { %3133 = vst.msk [vmem:[#allocation3] sm:$0x3] %vm3132_vm6, %v3129_v62 }
0x2204   :  { %4697 = shalt.err (!%p4694_p4)
}
0x2205   :  { %s4698_s25 = scalar_lea.hbm %s5887_s10, 32 }
0x2206   :  { %p4699_p5 = scmp.ne.s32.totalorder %s5887_s10, %s4698_s25  ;;  %p4702_p6 = scmp.lt.u32.totalorder %s4698_s25, %s5887_s10 }
0x2208   :  { %p4704_p7 = pnand %p4702_p6, %p4699_p5 }
0x220a   :  { %4707 = shalt.err (!%p4704_p7)
}
0x220b   :  { %3143 = dma.vmem_to_hbm [thread:$0]  %s3141_s13, 32, %s5887_s10, [#allocation4]  }
0x220c   :  { %4708 = dma.done.wait [#allocation4], 32  }
0x220d   :  { %4709 = vsyncadd [#allocation4], 4294967264 }
0x220e   :  { %3147 = vsyncpa [#allocation4], 1 }

</bundles_post_ra>
